<compile_context>
chip_gen: v5e
topology: v5e:2x2
jax: 0.10.0
libtpu: 0.0.40
codegen_flags: <defaults>
</compile_context>

<pallas_src>
import jax
import jax.numpy as jnp
from jax.experimental import pallas as pl
from jax.experimental.pallas import tpu as pltpu

DROP_P = 0.9
KEEP_P = 1.0 - DROP_P


def net_kernel(x_ref, w1_ref, b1_ref, w2s_ref, b2_ref, u_ref, o_ref):
    # fc1 + ReLU (sample-independent, tiny).
    h = jnp.dot(x_ref[...], w1_ref[...], preferred_element_type=jnp.float32)
    h = jnp.maximum(h + b1_ref[...], 0.0)                      # (B, H)

    # fc2 has output width 1: fold the (pre-scaled by 1/keep_p) fc2 weights in
    # with a VPU multiply; the contraction over H becomes an XLU lane-reduce.
    g = h * w2s_ref[...]                                       # (B, H)

    # MC-dropout keep mask per sample: single compare + select, scale already
    # folded into w2s.
    keep = u_ref[...] >= DROP_P                                # (B, S_blk, H)
    masked = jnp.where(keep, g[:, None, :], 0.0)               # (B, S_blk, H)

    # Reduce over H, add fc2 bias -> lane-dense (B, S_blk) output block.
    o_ref[...] = jnp.sum(masked, axis=-1) + b2_ref[...]        # (B, S_blk)


def net_forward_mc(x, w1, b1, w2, b2, u, *, s_block=128):
    """Runs S fused MC-dropout forward passes of Net. Returns (B, S); column s
    is one forward pass of the original module with an independent mask."""
    B, F = x.shape
    H = w1.shape[1]
    S = u.shape[1]
    assert u.shape == (B, S, H)
    assert S % s_block == 0

    # Fold dropout survivor scale 1/keep_p into fc2 weights (exact).
    w2s = (w2.reshape(1, H) * (1.0 / KEEP_P)).astype(jnp.float32)

    grid = (S // s_block,)
    return pl.pallas_call(
        net_kernel,
        out_shape=jax.ShapeDtypeStruct((B, S), jnp.float32),
        grid_spec=pltpu.PrefetchScalarGridSpec(
            num_scalar_prefetch=0,
            grid=grid,
            in_specs=[
                pl.BlockSpec((B, F), lambda s: (0, 0)),            # x (resident)
                pl.BlockSpec((F, H), lambda s: (0, 0)),            # w1 (resident)
                pl.BlockSpec((1, H), lambda s: (0, 0)),            # b1 (resident)
                pl.BlockSpec((1, H), lambda s: (0, 0)),            # w2 * 1/keep_p
                pl.BlockSpec((1, 1), lambda s: (0, 0)),            # b2
                pl.BlockSpec((B, s_block, H), lambda s: (0, s, 0)),  # uniforms
            ],
            out_specs=pl.BlockSpec((B, s_block), lambda s: (0, s)),
        ),
        compiler_params=pltpu.CompilerParams(
            dimension_semantics=("parallel",)),  # shards MC samples on v7x's 2 TCs
    )(x, w1, b1, w2s, b2, u)


def init_params(key, in_features, hidden_dim):
    # Deterministic init mimicking PyTorch nn.Linear: U(-1/sqrt(fan_in), ...).
    k1, k2, k3, k4 = jax.random.split(key, 4)
    bound1 = 1.0 / (in_features ** 0.5)
    bound2 = 1.0 / (hidden_dim ** 0.5)
    w1 = jax.random.uniform(k1, (in_features, hidden_dim), jnp.float32, -bound1, bound1)
    b1 = jax.random.uniform(k2, (1, hidden_dim), jnp.float32, -bound1, bound1)
    w2 = jax.random.uniform(k3, (hidden_dim, 1), jnp.float32, -bound2, bound2)
    b2 = jax.random.uniform(k4, (1, 1), jnp.float32, -bound2, bound2)
    return w1, b1, w2, b2


if __name__ == "__main__":
    # Wine Quality: 11 input features; hidden_dim from config -> 32.
    B, F_IN, HIDDEN = 8, 11, 32
    S = 256  # MC-dropout samples fused into one pallas_call (2 blocks of 128)

    key = jax.random.PRNGKey(0)
    kx, kp, ku = jax.random.split(key, 3)
    x = jax.random.normal(kx, (B, F_IN), dtype=jnp.float32)
    w1, b1, w2, b2 = init_params(kp, F_IN, HIDDEN)
    # One independent uniform draw per (row, sample, hidden unit) -> each MC
    # sample gets its own dropout mask.
    u = jax.random.uniform(ku, (B, S, HIDDEN), dtype=jnp.float32)

    out = net_forward_mc(x, w1, b1, w2, b2, u)
    jax.block_until_ready(out)
    assert out.shape == (B, S)

    # Pure-JAX reference with the same masks (spot check).
    h_ref = jnp.maximum(x @ w1 + b1, 0.0)                        # (B, H)
    g_ref = h_ref * (w2.reshape(1, HIDDEN) * (1.0 / KEEP_P))     # (B, H)
    ref = jnp.where(u >= DROP_P, g_ref[:, None, :], 0.0).sum(-1) + b2[0, 0]
    assert bool(jnp.all(jnp.isfinite(out)))
    assert jnp.allclose(out, ref, rtol=2e-2, atol=2e-2)

    print("KERNEL_OK")
</pallas_src>

<mosaic_0001>
module attributes {stable_mosaic.version = 11 : i64} {
  func.func @net_kernel(%arg0: i32, %arg1: memref<8x11xf32, #tpu.memory_space<vmem>>, %arg2: memref<11x32xf32, #tpu.memory_space<vmem>>, %arg3: memref<1x32xf32, #tpu.memory_space<vmem>>, %arg4: memref<1x32xf32, #tpu.memory_space<vmem>>, %arg5: memref<1x1xf32, #tpu.memory_space<vmem>>, %arg6: memref<8x128x32xf32, #tpu.memory_space<vmem>>, %arg7: memref<8x128xf32, #tpu.memory_space<vmem>>) attributes {dimension_semantics = [#tpu.dimension_semantics<parallel>], iteration_bounds = array<i64: 2>, scalar_prefetch = 0 : i64, scratch_operands = 0 : i64, tpu.core_type = #tpu.core_type<tc>, window_params = [{pipeline_mode = #tpu.pipeline_mode<synchronous>, transform_indices = @transform_0, window_bounds = array<i64: 8, 11>}, {pipeline_mode = #tpu.pipeline_mode<synchronous>, transform_indices = @transform_1, window_bounds = array<i64: 11, 32>}, {pipeline_mode = #tpu.pipeline_mode<synchronous>, transform_indices = @transform_2, window_bounds = array<i64: 1, 32>}, {pipeline_mode = #tpu.pipeline_mode<synchronous>, transform_indices = @transform_3, window_bounds = array<i64: 1, 32>}, {pipeline_mode = #tpu.pipeline_mode<synchronous>, transform_indices = @transform_4, window_bounds = array<i64: 1, 1>}, {transform_indices = @transform_5, window_bounds = array<i64: 8, 128, 32>}, {transform_indices = @transform_6, window_bounds = array<i64: 8, 128>}]} {
    %c0 = arith.constant 0 : index
    %c0_0 = arith.constant 0 : index
    %0 = vector.load %arg1[%c0, %c0_0] : memref<8x11xf32, #tpu.memory_space<vmem>>, vector<8x11xf32>
    %c0_1 = arith.constant 0 : index
    %c0_2 = arith.constant 0 : index
    %1 = vector.load %arg2[%c0_1, %c0_2] : memref<11x32xf32, #tpu.memory_space<vmem>>, vector<11x32xf32>
    %cst = arith.constant dense<0.000000e+00> : vector<8x32xf32>
    %2 = tpu.matmul %0, %1, %cst {dimension_numbers = #tpu.dot_dimension_numbers<[1], [0], [0], [1], [0, 0, 1, 1], [], []>} : vector<8x11xf32>, vector<11x32xf32>, vector<8x32xf32> -> vector<8x32xf32>
    %c0_3 = arith.constant 0 : index
    %c0_4 = arith.constant 0 : index
    %3 = vector.load %arg3[%c0_3, %c0_4] : memref<1x32xf32, #tpu.memory_space<vmem>>, vector<1x32xf32>
    %4 = vector.broadcast %3 : vector<1x32xf32> to vector<8x32xf32>
    %5 = arith.addf %2, %4 : vector<8x32xf32>
    %cst_5 = arith.constant 0.000000e+00 : f32
    %6 = vector.broadcast %cst_5 : f32 to vector<8x32xf32>
    %7 = arith.maximumf %5, %6 : vector<8x32xf32>
    %c0_6 = arith.constant 0 : index
    %c0_7 = arith.constant 0 : index
    %8 = vector.load %arg4[%c0_6, %c0_7] : memref<1x32xf32, #tpu.memory_space<vmem>>, vector<1x32xf32>
    %9 = vector.broadcast %8 : vector<1x32xf32> to vector<8x32xf32>
    %10 = arith.mulf %7, %9 : vector<8x32xf32>
    %c0_8 = arith.constant 0 : index
    %c0_9 = arith.constant 0 : index
    %c0_10 = arith.constant 0 : index
    %11 = vector.load %arg6[%c0_8, %c0_9, %c0_10] : memref<8x128x32xf32, #tpu.memory_space<vmem>>, vector<8x128x32xf32>
    %cst_11 = arith.constant 0.899999976 : f32
    %12 = vector.broadcast %cst_11 : f32 to vector<8x128x32xf32>
    %13 = arith.cmpf oge, %11, %12 : vector<8x128x32xf32>
    %14 = vector.shape_cast %10 : vector<8x32xf32> to vector<8x1x32xf32>
    %cst_12 = arith.constant 0.000000e+00 : f32
    %15 = vector.shape_cast %14 : vector<8x1x32xf32> to vector<8x1x32xf32>
    %16 = vector.broadcast %15 : vector<8x1x32xf32> to vector<8x128x32xf32>
    %17 = vector.broadcast %cst_12 : f32 to vector<8x128x32xf32>
    %18 = arith.select %13, %16, %17 : vector<8x128x32xi1>, vector<8x128x32xf32>
    %cst_13 = arith.constant dense<0.000000e+00> : vector<8x128xf32>
    %19 = vector.multi_reduction <add>, %18, %cst_13 [2] : vector<8x128x32xf32> to vector<8x128xf32>
    %c0_14 = arith.constant 0 : index
    %c0_15 = arith.constant 0 : index
    %20 = vector.load %arg5[%c0_14, %c0_15] : memref<1x1xf32, #tpu.memory_space<vmem>>, vector<1x1xf32>
    %21 = vector.broadcast %20 : vector<1x1xf32> to vector<8x128xf32>
    %22 = arith.addf %19, %21 : vector<8x128xf32>
    %c0_16 = arith.constant 0 : index
    %c0_17 = arith.constant 0 : index
    %23 = vector.load %arg7[%c0_16, %c0_17] : memref<8x128xf32, #tpu.memory_space<vmem>>, vector<8x128xf32>
    tpu.vector_store %arg7[%c0_16, %c0_17], %22 {strides = array<i32>} : memref<8x128xf32, #tpu.memory_space<vmem>>, vector<8x128xf32>,
    return
  }
  func.func @transform_0(%arg0: i32) -> (i32, i32) {
    %c0_i32 = arith.constant 0 : i32
    %c0_i32_0 = arith.constant 0 : i32
    %c0_i32_1 = arith.constant 0 : i32
    return %c0_i32, %c0_i32_0 : i32, i32
  }
  func.func @transform_1(%arg0: i32) -> (i32, i32) {
    %c0_i32 = arith.constant 0 : i32
    %c0_i32_0 = arith.constant 0 : i32
    %c0_i32_1 = arith.constant 0 : i32
    return %c0_i32, %c0_i32_0 : i32, i32
  }
  func.func @transform_2(%arg0: i32) -> (i32, i32) {
    %c0_i32 = arith.constant 0 : i32
    %c0_i32_0 = arith.constant 0 : i32
    %c0_i32_1 = arith.constant 0 : i32
    return %c0_i32, %c0_i32_0 : i32, i32
  }
  func.func @transform_3(%arg0: i32) -> (i32, i32) {
    %c0_i32 = arith.constant 0 : i32
    %c0_i32_0 = arith.constant 0 : i32
    %c0_i32_1 = arith.constant 0 : i32
    return %c0_i32, %c0_i32_0 : i32, i32
  }
  func.func @transform_4(%arg0: i32) -> (i32, i32) {
    %c0_i32 = arith.constant 0 : i32
    %c0_i32_0 = arith.constant 0 : i32
    %c0_i32_1 = arith.constant 0 : i32
    return %c0_i32, %c0_i32_0 : i32, i32
  }
  func.func @transform_5(%arg0: i32) -> (i32, i32, i32) {
    %c0_i32 = arith.constant 0 : i32
    %c0_i32_0 = arith.constant 0 : i32
    %c0_i32_1 = arith.constant 0 : i32
    return %c0_i32, %arg0, %c0_i32_0 : i32, i32, i32
  }
  func.func @transform_6(%arg0: i32) -> (i32, i32) {
    %c0_i32 = arith.constant 0 : i32
    %c0_i32_0 = arith.constant 0 : i32
    return %c0_i32, %arg0 : i32, i32
  }
}

</mosaic_0001>

<bundles_post_ra>
// kernel: tpu_custom_call.1
= control target key start
LH: loop header
LB: loop body
LE: loop exit
PB: predicated region body
PF: predicated region fallthrough
CT: control target
= control target key end

     0   :  { %s4271_s0 = inlined_call_operand.vmem [shape: f32[8,11], index: 0, kind: input, shape index: {}]   ;;  %s4272_s1 = inlined_call_operand.vmem [shape: f32[11,32], index: 1, kind: input, shape index: {}]   ;;  %s4273_s2 = inlined_call_operand.vmem [shape: f32[1,32], index: 2, kind: input, shape index: {}]   ;;  %s4274_s3 = inlined_call_operand.vmem [shape: f32[1,32], index: 3, kind: input, shape index: {}]   ;;  %s4275_s4 = inlined_call_operand.<no memory space> [shape: f32[1,1], index: 4, kind: input, shape index: {}]   ;;  %s4276_s5 = inlined_call_operand.vmem [shape: f32[8,256,32], index: 5, kind: input, shape index: {}]   ;;  %s4277_s6 = inlined_call_operand.hbm [shape: f32[8,256], index: 6, kind: output, shape index: {}]  }
   0x1   :  { %v11_v0 = vstv %s4275_s4 }
   0x2   :  { %12 = vst [vmem:[#allocation2] sm:$0x1] %v11_v0 }
   0x3   :  { %13 = vsyncpa [#allocation5], 0 }
   0x4   :  { %15 = vsyncpa [#allocation5 + $0x1], 0  ;;  %s2434_s23 = smov 0   ;;  %s2436_s24 = smov 0  }
   0x5   :  { %s2438_s25 = smov 0   ;;  %s2440_s26 = smov 0  }
   0x6 LB: > { %s2270_s4 = sadd.s32 4294967295, %s2393_s26   ;;  %s2271_s27 = sadd.s32 4294967294, %s2393_s26   ;;  %s2393_s26 = sphi %s2440_s26, %s4534_s26   ;;  %s2389_s25 = sphi %s2438_s25, %s4533_s25   ;;  %s2385_s24 = sphi %s2436_s24, %s4532_s24   ;;  %s2381_s23 = sphi %s2434_s23, %s4531_s23  }
   0x7   : > { %s2457_s28 = sadd.s32 1, %s2393_s26   ;;  %s133_s29 = sadd.s32 1, %s2389_s25 }
   0x8   : > { %s130_s30 = ssub.s32 %s2393_s26, %s2457_s28  ;;  %p140_p0 = scmp.ne.s32.totalorder %s2389_s25, %s2385_s24 }
   0x9   : > { %p131_p1 = scmp.eq.s32.totalorder %s130_s30, 0  ;;  %p141_p2 = scmp.eq.s32.totalorder %s2393_s26, 0 }
   0xa   : > { %p170_p3 = scmp.eq.s32.totalorder %s2270_s4, 1  ;;  %p175_p4 = scmp.ne.s32.totalorder %s2385_s24, %s2381_s23 }
   0xb   : > { %s2470_s7 = scalar_select %p131_p1, %s2389_s25, %s133_s29  }
   0xc   : > { %p142_p5 = por %p141_p2, %p140_p0  ;;  %p2472_p6 = por %p170_p3, %p140_p0 }
   0xd   : > { %p176_p7 = scmp.eq.s32.totalorder %s2271_s27, 1  ;;  %p2273_p9 = scmp.ge.s32.totalorder %s2393_s26, 2 }
   0xf   : > { %p2476_p8 = por %p176_p7, %p175_p4  ;;  %207 = sbr.rel (%p2273_p9) target bundleno = 152 (0x98), region = 36 }
  0x14   : > { %210 = sbr.rel (!%p142_p5) target bundleno = 152 (0x98), region = 40  ;;  %s212_s10 = sand.u32 (%p142_p5), 1, %s2389_s25  }
  0x15   : > { %s2286_s11 = sshll.u32 (%p142_p5), %s2393_s26, 7  ;;  %s2274_s12 = sshll.u32 (%p142_p5), %s212_s10, 10 }
  0x16   : > { %s2488_s15 = scalar_lea.vmem (%p142_p5), %s4276_s5, %s2286_s11  ;;  %s2493_s16 = scalar_lea.vmem (%p142_p5), [#allocation3], %s2274_s12 }
  0x17   : > { %v500_v1 = vld [vmem:[%s2488_s15] sm:$0xff] (%p142_p5)  ;;  %v502_v2 = vld [vmem:[%s2488_s15 + $0x8] sm:$0xff] (%p142_p5)  ;;  %v504_v3 = vld [vmem:[%s2488_s15 + $0x10] sm:$0xff] (%p142_p5) }
  0x18   : > { %501 = vst [vmem:[%s2493_s16] sm:$0xff] (%p142_p5), %v500_v1  ;;  %v506_v4 = vld [vmem:[%s2488_s15 + $0x18] sm:$0xff] (%p142_p5)  ;;  %v508_v5 = vld [vmem:[%s2488_s15 + $0x20] sm:$0xff] (%p142_p5)  ;;  %v510_v6 = vld [vmem:[%s2488_s15 + $0x28] sm:$0xff] (%p142_p5) }
  0x19   : > { %503 = vst [vmem:[%s2493_s16 + $0x8] sm:$0xff] %v502_v2  ;;  %v512_v7 = vld [vmem:[%s2488_s15 + $0x30] sm:$0xff]  ;;  %v514_v8 = vld [vmem:[%s2488_s15 + $0x38] sm:$0xff]  ;;  %v516_v9 = vld [vmem:[%s2488_s15 + $0x40] sm:$0xff] }
  0x1a   : > { %505 = vst [vmem:[%s2493_s16 + $0x10] sm:$0xff] %v504_v3  ;;  %v518_v10 = vld [vmem:[%s2488_s15 + $0x48] sm:$0xff]  ;;  %v520_v11 = vld [vmem:[%s2488_s15 + $0x50] sm:$0xff]  ;;  %v522_v12 = vld [vmem:[%s2488_s15 + $0x58] sm:$0xff] }
  0x1b   : > { %507 = vst [vmem:[%s2493_s16 + $0x18] sm:$0xff] %v506_v4  ;;  %v524_v13 = vld [vmem:[%s2488_s15 + $0x60] sm:$0xff]  ;;  %v526_v14 = vld [vmem:[%s2488_s15 + $0x68] sm:$0xff]  ;;  %v528_v15 = vld [vmem:[%s2488_s15 + $0x70] sm:$0xff] }
  0x1c   : > { %509 = vst [vmem:[%s2493_s16 + $0x20] sm:$0xff] %v508_v5  ;;  %v530_v16 = vld [vmem:[%s2488_s15 + $0x78] sm:$0xff]  ;;  %v532_v17 = vld [vmem:[%s2488_s15 + $0x100] sm:$0xff]  ;;  %v534_v18 = vld [vmem:[%s2488_s15 + $0x108] sm:$0xff] }
  0x1d   : > { %511 = vst [vmem:[%s2493_s16 + $0x28] sm:$0xff] %v510_v6  ;;  %v536_v19 = vld [vmem:[%s2488_s15 + $0x110] sm:$0xff]  ;;  %v538_v20 = vld [vmem:[%s2488_s15 + $0x118] sm:$0xff]  ;;  %v540_v21 = vld [vmem:[%s2488_s15 + $0x120] sm:$0xff] }
  0x1e   : > { %513 = vst [vmem:[%s2493_s16 + $0x30] sm:$0xff] %v512_v7  ;;  %v542_v22 = vld [vmem:[%s2488_s15 + $0x128] sm:$0xff]  ;;  %v544_v23 = vld [vmem:[%s2488_s15 + $0x130] sm:$0xff]  ;;  %v546_v24 = vld [vmem:[%s2488_s15 + $0x138] sm:$0xff] }
  0x1f   : > { %515 = vst [vmem:[%s2493_s16 + $0x38] sm:$0xff] %v514_v8  ;;  %v548_v25 = vld [vmem:[%s2488_s15 + $0x140] sm:$0xff]  ;;  %v550_v26 = vld [vmem:[%s2488_s15 + $0x148] sm:$0xff]  ;;  %v552_v27 = vld [vmem:[%s2488_s15 + $0x150] sm:$0xff] }
  0x20   : > { %517 = vst [vmem:[%s2493_s16 + $0x40] sm:$0xff] %v516_v9  ;;  %v554_v28 = vld [vmem:[%s2488_s15 + $0x158] sm:$0xff]  ;;  %v556_v29 = vld [vmem:[%s2488_s15 + $0x160] sm:$0xff]  ;;  %v558_v30 = vld [vmem:[%s2488_s15 + $0x168] sm:$0xff] }
  0x21   : > { %519 = vst [vmem:[%s2493_s16 + $0x48] sm:$0xff] %v518_v10  ;;  %v560_v31 = vld [vmem:[%s2488_s15 + $0x170] sm:$0xff]  ;;  %v562_v32 = vld [vmem:[%s2488_s15 + $0x178] sm:$0xff]  ;;  %v564_v33 = vld [vmem:[%s2488_s15 + $0x200] sm:$0xff] }
  0x22   : > { %521 = vst [vmem:[%s2493_s16 + $0x50] sm:$0xff] %v520_v11  ;;  %v566_v34 = vld [vmem:[%s2488_s15 + $0x208] sm:$0xff]  ;;  %v568_v35 = vld [vmem:[%s2488_s15 + $0x210] sm:$0xff]  ;;  %v570_v36 = vld [vmem:[%s2488_s15 + $0x218] sm:$0xff] }
  0x23   : > { %523 = vst [vmem:[%s2493_s16 + $0x58] sm:$0xff] %v522_v12  ;;  %v572_v37 = vld [vmem:[%s2488_s15 + $0x220] sm:$0xff]  ;;  %v574_v38 = vld [vmem:[%s2488_s15 + $0x228] sm:$0xff]  ;;  %v576_v39 = vld [vmem:[%s2488_s15 + $0x230] sm:$0xff] }
  0x24   : > { %525 = vst [vmem:[%s2493_s16 + $0x60] sm:$0xff] %v524_v13  ;;  %v578_v40 = vld [vmem:[%s2488_s15 + $0x238] sm:$0xff]  ;;  %v580_v41 = vld [vmem:[%s2488_s15 + $0x240] sm:$0xff]  ;;  %v582_v42 = vld [vmem:[%s2488_s15 + $0x248] sm:$0xff] }
  0x25   : > { %527 = vst [vmem:[%s2493_s16 + $0x68] sm:$0xff] %v526_v14  ;;  %v584_v43 = vld [vmem:[%s2488_s15 + $0x250] sm:$0xff]  ;;  %v586_v44 = vld [vmem:[%s2488_s15 + $0x258] sm:$0xff]  ;;  %v588_v45 = vld [vmem:[%s2488_s15 + $0x260] sm:$0xff] }
  0x26   : > { %529 = vst [vmem:[%s2493_s16 + $0x70] sm:$0xff] %v528_v15  ;;  %v590_v46 = vld [vmem:[%s2488_s15 + $0x268] sm:$0xff]  ;;  %v592_v47 = vld [vmem:[%s2488_s15 + $0x270] sm:$0xff]  ;;  %v594_v48 = vld [vmem:[%s2488_s15 + $0x278] sm:$0xff] }
  0x27   : > { %531 = vst [vmem:[%s2493_s16 + $0x78] sm:$0xff] %v530_v16  ;;  %v596_v49 = vld [vmem:[%s2488_s15 + $0x300] sm:$0xff]  ;;  %v598_v50 = vld [vmem:[%s2488_s15 + $0x308] sm:$0xff]  ;;  %v600_v51 = vld [vmem:[%s2488_s15 + $0x310] sm:$0xff] }
  0x28   : > { %533 = vst [vmem:[%s2493_s16 + $0x80] sm:$0xff] %v532_v17  ;;  %v602_v52 = vld [vmem:[%s2488_s15 + $0x318] sm:$0xff]  ;;  %v604_v53 = vld [vmem:[%s2488_s15 + $0x320] sm:$0xff]  ;;  %v606_v54 = vld [vmem:[%s2488_s15 + $0x328] sm:$0xff] }
  0x29   : > { %535 = vst [vmem:[%s2493_s16 + $0x88] sm:$0xff] %v534_v18  ;;  %v608_v55 = vld [vmem:[%s2488_s15 + $0x330] sm:$0xff]  ;;  %v610_v56 = vld [vmem:[%s2488_s15 + $0x338] sm:$0xff]  ;;  %v612_v57 = vld [vmem:[%s2488_s15 + $0x340] sm:$0xff] }
  0x2a   : > { %537 = vst [vmem:[%s2493_s16 + $0x90] sm:$0xff] %v536_v19  ;;  %v614_v58 = vld [vmem:[%s2488_s15 + $0x348] sm:$0xff]  ;;  %v616_v59 = vld [vmem:[%s2488_s15 + $0x350] sm:$0xff]  ;;  %v618_v60 = vld [vmem:[%s2488_s15 + $0x358] sm:$0xff] }
  0x2b   : > { %539 = vst [vmem:[%s2493_s16 + $0x98] sm:$0xff] %v538_v20  ;;  %v620_v61 = vld [vmem:[%s2488_s15 + $0x360] sm:$0xff]  ;;  %v622_v62 = vld [vmem:[%s2488_s15 + $0x368] sm:$0xff]  ;;  %v624_v63 = vld [vmem:[%s2488_s15 + $0x370] sm:$0xff] }
  0x2c   : > { %541 = vst [vmem:[%s2493_s16 + $0xa0] sm:$0xff] %v540_v21  ;;  %v626_v0 = vld [vmem:[%s2488_s15 + $0x378] sm:$0xff]  ;;  %v628_v1 = vld [vmem:[%s2488_s15 + $0x400] sm:$0xff]  ;;  %v630_v2 = vld [vmem:[%s2488_s15 + $0x408] sm:$0xff] }
  0x2d   : > { %543 = vst [vmem:[%s2493_s16 + $0xa8] sm:$0xff] %v542_v22  ;;  %v632_v3 = vld [vmem:[%s2488_s15 + $0x410] sm:$0xff]  ;;  %v634_v4 = vld [vmem:[%s2488_s15 + $0x418] sm:$0xff]  ;;  %v636_v5 = vld [vmem:[%s2488_s15 + $0x420] sm:$0xff] }
  0x2e   : > { %545 = vst [vmem:[%s2493_s16 + $0xb0] sm:$0xff] %v544_v23  ;;  %v638_v6 = vld [vmem:[%s2488_s15 + $0x428] sm:$0xff]  ;;  %v640_v7 = vld [vmem:[%s2488_s15 + $0x430] sm:$0xff]  ;;  %v642_v8 = vld [vmem:[%s2488_s15 + $0x438] sm:$0xff] }
  0x2f   : > { %547 = vst [vmem:[%s2493_s16 + $0xb8] sm:$0xff] %v546_v24  ;;  %v644_v9 = vld [vmem:[%s2488_s15 + $0x440] sm:$0xff]  ;;  %v646_v10 = vld [vmem:[%s2488_s15 + $0x448] sm:$0xff]  ;;  %v648_v11 = vld [vmem:[%s2488_s15 + $0x450] sm:$0xff] }
  0x30   : > { %549 = vst [vmem:[%s2493_s16 + $0xc0] sm:$0xff] %v548_v25  ;;  %v650_v12 = vld [vmem:[%s2488_s15 + $0x458] sm:$0xff]  ;;  %v652_v13 = vld [vmem:[%s2488_s15 + $0x460] sm:$0xff]  ;;  %v654_v14 = vld [vmem:[%s2488_s15 + $0x468] sm:$0xff] }
  0x31   : > { %551 = vst [vmem:[%s2493_s16 + $0xc8] sm:$0xff] %v550_v26  ;;  %v656_v15 = vld [vmem:[%s2488_s15 + $0x470] sm:$0xff]  ;;  %v658_v16 = vld [vmem:[%s2488_s15 + $0x478] sm:$0xff]  ;;  %v660_v17 = vld [vmem:[%s2488_s15 + $0x500] sm:$0xff] }
  0x32   : > { %553 = vst [vmem:[%s2493_s16 + $0xd0] sm:$0xff] %v552_v27  ;;  %v662_v18 = vld [vmem:[%s2488_s15 + $0x508] sm:$0xff]  ;;  %v664_v19 = vld [vmem:[%s2488_s15 + $0x510] sm:$0xff]  ;;  %v666_v20 = vld [vmem:[%s2488_s15 + $0x518] sm:$0xff] }
  0x33   : > { %555 = vst [vmem:[%s2493_s16 + $0xd8] sm:$0xff] %v554_v28  ;;  %v668_v21 = vld [vmem:[%s2488_s15 + $0x520] sm:$0xff]  ;;  %v670_v22 = vld [vmem:[%s2488_s15 + $0x528] sm:$0xff]  ;;  %v672_v23 = vld [vmem:[%s2488_s15 + $0x530] sm:$0xff] }
  0x34   : > { %557 = vst [vmem:[%s2493_s16 + $0xe0] sm:$0xff] %v556_v29  ;;  %v674_v24 = vld [vmem:[%s2488_s15 + $0x538] sm:$0xff]  ;;  %v676_v25 = vld [vmem:[%s2488_s15 + $0x540] sm:$0xff]  ;;  %v678_v26 = vld [vmem:[%s2488_s15 + $0x548] sm:$0xff] }
  0x35   : > { %559 = vst [vmem:[%s2493_s16 + $0xe8] sm:$0xff] %v558_v30  ;;  %v680_v27 = vld [vmem:[%s2488_s15 + $0x550] sm:$0xff]  ;;  %v682_v28 = vld [vmem:[%s2488_s15 + $0x558] sm:$0xff]  ;;  %v684_v29 = vld [vmem:[%s2488_s15 + $0x560] sm:$0xff] }
  0x36   : > { %561 = vst [vmem:[%s2493_s16 + $0xf0] sm:$0xff] %v560_v31  ;;  %v686_v30 = vld [vmem:[%s2488_s15 + $0x568] sm:$0xff]  ;;  %v688_v31 = vld [vmem:[%s2488_s15 + $0x570] sm:$0xff] }
  0x37   : > { %563 = vst [vmem:[%s2493_s16 + $0xf8] sm:$0xff] %v562_v32  ;;  %v690_v32 = vld [vmem:[%s2488_s15 + $0x578] sm:$0xff] }
  0x38   : > { %565 = vst [vmem:[%s2493_s16 + $0x100] sm:$0xff] %v564_v33  ;;  %v692_v33 = vld [vmem:[%s2488_s15 + $0x600] sm:$0xff] }
  0x39   : > { %567 = vst [vmem:[%s2493_s16 + $0x108] sm:$0xff] %v566_v34  ;;  %v694_v34 = vld [vmem:[%s2488_s15 + $0x608] sm:$0xff] }
  0x3a   : > { %569 = vst [vmem:[%s2493_s16 + $0x110] sm:$0xff] %v568_v35  ;;  %v696_v35 = vld [vmem:[%s2488_s15 + $0x610] sm:$0xff] }
  0x3b   : > { %571 = vst [vmem:[%s2493_s16 + $0x118] sm:$0xff] %v570_v36  ;;  %v698_v36 = vld [vmem:[%s2488_s15 + $0x618] sm:$0xff] }
  0x3c   : > { %573 = vst [vmem:[%s2493_s16 + $0x120] sm:$0xff] %v572_v37  ;;  %v700_v37 = vld [vmem:[%s2488_s15 + $0x620] sm:$0xff] }
  0x3d   : > { %575 = vst [vmem:[%s2493_s16 + $0x128] sm:$0xff] %v574_v38  ;;  %v702_v38 = vld [vmem:[%s2488_s15 + $0x628] sm:$0xff] }
  0x3e   : > { %577 = vst [vmem:[%s2493_s16 + $0x130] sm:$0xff] %v576_v39  ;;  %v704_v39 = vld [vmem:[%s2488_s15 + $0x630] sm:$0xff] }
  0x3f   : > { %579 = vst [vmem:[%s2493_s16 + $0x138] sm:$0xff] %v578_v40  ;;  %v706_v40 = vld [vmem:[%s2488_s15 + $0x638] sm:$0xff] }
  0x40   : > { %581 = vst [vmem:[%s2493_s16 + $0x140] sm:$0xff] %v580_v41  ;;  %v708_v41 = vld [vmem:[%s2488_s15 + $0x640] sm:$0xff] }
  0x41   : > { %583 = vst [vmem:[%s2493_s16 + $0x148] sm:$0xff] %v582_v42  ;;  %v710_v42 = vld [vmem:[%s2488_s15 + $0x648] sm:$0xff] }
  0x42   : > { %585 = vst [vmem:[%s2493_s16 + $0x150] sm:$0xff] %v584_v43  ;;  %v712_v43 = vld [vmem:[%s2488_s15 + $0x650] sm:$0xff] }
  0x43   : > { %587 = vst [vmem:[%s2493_s16 + $0x158] sm:$0xff] %v586_v44  ;;  %v714_v44 = vld [vmem:[%s2488_s15 + $0x658] sm:$0xff] }
  0x44   : > { %589 = vst [vmem:[%s2493_s16 + $0x160] sm:$0xff] %v588_v45  ;;  %v716_v45 = vld [vmem:[%s2488_s15 + $0x660] sm:$0xff] }
  0x45   : > { %591 = vst [vmem:[%s2493_s16 + $0x168] sm:$0xff] %v590_v46  ;;  %v718_v46 = vld [vmem:[%s2488_s15 + $0x668] sm:$0xff] }
  0x46   : > { %593 = vst [vmem:[%s2493_s16 + $0x170] sm:$0xff] %v592_v47  ;;  %v720_v47 = vld [vmem:[%s2488_s15 + $0x670] sm:$0xff] }
  0x47   : > { %595 = vst [vmem:[%s2493_s16 + $0x178] sm:$0xff] %v594_v48  ;;  %v722_v48 = vld [vmem:[%s2488_s15 + $0x678] sm:$0xff] }
  0x48   : > { %597 = vst [vmem:[%s2493_s16 + $0x180] sm:$0xff] %v596_v49  ;;  %v724_v49 = vld [vmem:[%s2488_s15 + $0x700] sm:$0xff] }
  0x49   : > { %599 = vst [vmem:[%s2493_s16 + $0x188] sm:$0xff] %v598_v50  ;;  %v726_v50 = vld [vmem:[%s2488_s15 + $0x708] sm:$0xff] }
  0x4a   : > { %601 = vst [vmem:[%s2493_s16 + $0x190] sm:$0xff] %v600_v51  ;;  %v728_v51 = vld [vmem:[%s2488_s15 + $0x710] sm:$0xff] }
  0x4b   : > { %603 = vst [vmem:[%s2493_s16 + $0x198] sm:$0xff] %v602_v52  ;;  %v730_v52 = vld [vmem:[%s2488_s15 + $0x718] sm:$0xff] }
  0x4c   : > { %605 = vst [vmem:[%s2493_s16 + $0x1a0] sm:$0xff] %v604_v53  ;;  %v732_v53 = vld [vmem:[%s2488_s15 + $0x720] sm:$0xff] }
  0x4d   : > { %607 = vst [vmem:[%s2493_s16 + $0x1a8] sm:$0xff] %v606_v54  ;;  %v734_v54 = vld [vmem:[%s2488_s15 + $0x728] sm:$0xff] }
  0x4e   : > { %609 = vst [vmem:[%s2493_s16 + $0x1b0] sm:$0xff] %v608_v55  ;;  %v736_v55 = vld [vmem:[%s2488_s15 + $0x730] sm:$0xff] }
  0x4f   : > { %611 = vst [vmem:[%s2493_s16 + $0x1b8] sm:$0xff] %v610_v56  ;;  %v738_v56 = vld [vmem:[%s2488_s15 + $0x738] sm:$0xff] }
  0x50   : > { %613 = vst [vmem:[%s2493_s16 + $0x1c0] sm:$0xff] %v612_v57  ;;  %v740_v57 = vld [vmem:[%s2488_s15 + $0x740] sm:$0xff] }
  0x51   : > { %615 = vst [vmem:[%s2493_s16 + $0x1c8] sm:$0xff] %v614_v58  ;;  %v742_v58 = vld [vmem:[%s2488_s15 + $0x748] sm:$0xff] }
  0x52   : > { %617 = vst [vmem:[%s2493_s16 + $0x1d0] sm:$0xff] %v616_v59  ;;  %v744_v59 = vld [vmem:[%s2488_s15 + $0x750] sm:$0xff] }
  0x53   : > { %619 = vst [vmem:[%s2493_s16 + $0x1d8] sm:$0xff] %v618_v60  ;;  %v746_v60 = vld [vmem:[%s2488_s15 + $0x758] sm:$0xff] }
  0x54   : > { %621 = vst [vmem:[%s2493_s16 + $0x1e0] sm:$0xff] %v620_v61  ;;  %v748_v61 = vld [vmem:[%s2488_s15 + $0x760] sm:$0xff] }
  0x55   : > { %623 = vst [vmem:[%s2493_s16 + $0x1e8] sm:$0xff] %v622_v62  ;;  %v750_v62 = vld [vmem:[%s2488_s15 + $0x768] sm:$0xff] }
  0x56   : > { %625 = vst [vmem:[%s2493_s16 + $0x1f0] sm:$0xff] %v624_v63  ;;  %v752_v63 = vld [vmem:[%s2488_s15 + $0x770] sm:$0xff] }
  0x57   : > { %627 = vst [vmem:[%s2493_s16 + $0x1f8] sm:$0xff] %v626_v0  ;;  %v754_v0 = vld [vmem:[%s2488_s15 + $0x778] sm:$0xff] }
  0x58   : > { %629 = vst [vmem:[%s2493_s16 + $0x200] sm:$0xff] %v628_v1 }
  0x59   : > { %631 = vst [vmem:[%s2493_s16 + $0x208] sm:$0xff] %v630_v2 }
  0x5a   : > { %633 = vst [vmem:[%s2493_s16 + $0x210] sm:$0xff] %v632_v3 }
  0x5b   : > { %635 = vst [vmem:[%s2493_s16 + $0x218] sm:$0xff] %v634_v4 }
  0x5c   : > { %637 = vst [vmem:[%s2493_s16 + $0x220] sm:$0xff] %v636_v5 }
  0x5d   : > { %639 = vst [vmem:[%s2493_s16 + $0x228] sm:$0xff] %v638_v6 }
  0x5e   : > { %641 = vst [vmem:[%s2493_s16 + $0x230] sm:$0xff] %v640_v7 }
  0x5f   : > { %643 = vst [vmem:[%s2493_s16 + $0x238] sm:$0xff] %v642_v8 }
  0x60   : > { %645 = vst [vmem:[%s2493_s16 + $0x240] sm:$0xff] %v644_v9 }
  0x61   : > { %647 = vst [vmem:[%s2493_s16 + $0x248] sm:$0xff] %v646_v10 }
  0x62   : > { %649 = vst [vmem:[%s2493_s16 + $0x250] sm:$0xff] %v648_v11 }
  0x63   : > { %651 = vst [vmem:[%s2493_s16 + $0x258] sm:$0xff] %v650_v12 }
  0x64   : > { %653 = vst [vmem:[%s2493_s16 + $0x260] sm:$0xff] %v652_v13 }
  0x65   : > { %655 = vst [vmem:[%s2493_s16 + $0x268] sm:$0xff] %v654_v14 }
  0x66   : > { %657 = vst [vmem:[%s2493_s16 + $0x270] sm:$0xff] %v656_v15 }
  0x67   : > { %659 = vst [vmem:[%s2493_s16 + $0x278] sm:$0xff] %v658_v16 }
  0x68   : > { %661 = vst [vmem:[%s2493_s16 + $0x280] sm:$0xff] %v660_v17 }
  0x69   : > { %663 = vst [vmem:[%s2493_s16 + $0x288] sm:$0xff] %v662_v18 }
  0x6a   : > { %665 = vst [vmem:[%s2493_s16 + $0x290] sm:$0xff] %v664_v19 }
  0x6b   : > { %667 = vst [vmem:[%s2493_s16 + $0x298] sm:$0xff] %v666_v20 }
  0x6c   : > { %669 = vst [vmem:[%s2493_s16 + $0x2a0] sm:$0xff] %v668_v21 }
  0x6d   : > { %671 = vst [vmem:[%s2493_s16 + $0x2a8] sm:$0xff] %v670_v22 }
  0x6e   : > { %673 = vst [vmem:[%s2493_s16 + $0x2b0] sm:$0xff] %v672_v23 }
  0x6f   : > { %675 = vst [vmem:[%s2493_s16 + $0x2b8] sm:$0xff] %v674_v24 }
  0x70   : > { %677 = vst [vmem:[%s2493_s16 + $0x2c0] sm:$0xff] %v676_v25 }
  0x71   : > { %679 = vst [vmem:[%s2493_s16 + $0x2c8] sm:$0xff] %v678_v26 }
  0x72   : > { %681 = vst [vmem:[%s2493_s16 + $0x2d0] sm:$0xff] %v680_v27 }
  0x73   : > { %683 = vst [vmem:[%s2493_s16 + $0x2d8] sm:$0xff] %v682_v28 }
  0x74   : > { %685 = vst [vmem:[%s2493_s16 + $0x2e0] sm:$0xff] %v684_v29 }
  0x75   : > { %687 = vst [vmem:[%s2493_s16 + $0x2e8] sm:$0xff] %v686_v30 }
  0x76   : > { %689 = vst [vmem:[%s2493_s16 + $0x2f0] sm:$0xff] %v688_v31 }
  0x77   : > { %691 = vst [vmem:[%s2493_s16 + $0x2f8] sm:$0xff] %v690_v32 }
  0x78   : > { %693 = vst [vmem:[%s2493_s16 + $0x300] sm:$0xff] %v692_v33 }
  0x79   : > { %695 = vst [vmem:[%s2493_s16 + $0x308] sm:$0xff] %v694_v34 }
  0x7a   : > { %697 = vst [vmem:[%s2493_s16 + $0x310] sm:$0xff] %v696_v35 }
  0x7b   : > { %699 = vst [vmem:[%s2493_s16 + $0x318] sm:$0xff] %v698_v36 }
  0x7c   : > { %701 = vst [vmem:[%s2493_s16 + $0x320] sm:$0xff] %v700_v37 }
  0x7d   : > { %703 = vst [vmem:[%s2493_s16 + $0x328] sm:$0xff] %v702_v38 }
  0x7e   : > { %705 = vst [vmem:[%s2493_s16 + $0x330] sm:$0xff] %v704_v39 }
  0x7f   : > { %707 = vst [vmem:[%s2493_s16 + $0x338] sm:$0xff] %v706_v40 }
  0x80   : > { %709 = vst [vmem:[%s2493_s16 + $0x340] sm:$0xff] %v708_v41 }
  0x81   : > { %711 = vst [vmem:[%s2493_s16 + $0x348] sm:$0xff] %v710_v42 }
  0x82   : > { %713 = vst [vmem:[%s2493_s16 + $0x350] sm:$0xff] %v712_v43 }
  0x83   : > { %715 = vst [vmem:[%s2493_s16 + $0x358] sm:$0xff] %v714_v44 }
  0x84   : > { %717 = vst [vmem:[%s2493_s16 + $0x360] sm:$0xff] %v716_v45 }
  0x85   : > { %719 = vst [vmem:[%s2493_s16 + $0x368] sm:$0xff] %v718_v46 }
  0x86   : > { %721 = vst [vmem:[%s2493_s16 + $0x370] sm:$0xff] %v720_v47 }
  0x87   : > { %723 = vst [vmem:[%s2493_s16 + $0x378] sm:$0xff] %v722_v48 }
  0x88   : > { %725 = vst [vmem:[%s2493_s16 + $0x380] sm:$0xff] %v724_v49 }
  0x89   : > { %727 = vst [vmem:[%s2493_s16 + $0x388] sm:$0xff] %v726_v50 }
  0x8a   : > { %729 = vst [vmem:[%s2493_s16 + $0x390] sm:$0xff] %v728_v51 }
  0x8b   : > { %731 = vst [vmem:[%s2493_s16 + $0x398] sm:$0xff] %v730_v52 }
  0x8c   : > { %733 = vst [vmem:[%s2493_s16 + $0x3a0] sm:$0xff] %v732_v53 }
  0x8d   : > { %735 = vst [vmem:[%s2493_s16 + $0x3a8] sm:$0xff] %v734_v54 }
  0x8e   : > { %737 = vst [vmem:[%s2493_s16 + $0x3b0] sm:$0xff] %v736_v55 }
  0x8f   : > { %739 = vst [vmem:[%s2493_s16 + $0x3b8] sm:$0xff] %v738_v56 }
  0x90   : > { %741 = vst [vmem:[%s2493_s16 + $0x3c0] sm:$0xff] %v740_v57 }
  0x91   : > { %743 = vst [vmem:[%s2493_s16 + $0x3c8] sm:$0xff] %v742_v58 }
  0x92   : > { %745 = vst [vmem:[%s2493_s16 + $0x3d0] sm:$0xff] %v744_v59 }
  0x93   : > { %747 = vst [vmem:[%s2493_s16 + $0x3d8] sm:$0xff] %v746_v60 }
  0x94   : > { %749 = vst [vmem:[%s2493_s16 + $0x3e0] sm:$0xff] %v748_v61 }
  0x95   : > { %751 = vst [vmem:[%s2493_s16 + $0x3e8] sm:$0xff] %v750_v62 }
  0x96   : > { %753 = vst [vmem:[%s2493_s16 + $0x3f0] sm:$0xff] %v752_v63 }
  0x97   : > { %755 = vst [vmem:[%s2493_s16 + $0x3f8] sm:$0xff] %v754_v0 }
  0x98 PF: > { %p2277_p10 = scmp.ge.s32.totalorder %s2393_s26, 1  ;;  %p760_p11 = scmp.lt.s32.totalorder %s2393_s26, 3 }
  0x9a   : > { %p761_p12 = pnand %p2277_p10, %p760_p11 }
  0x9c   : > { %764 = sbr.rel (%p761_p12) target bundleno = 849 (0x351), region = 78 }
  0xa1   : > { %v799_v1 = vld [vmem:[%s4272_s1 + $0x8] sm:$0x7]  ;;  %vm808_vm0 = vcmask 1042432   ;;  %v798_v2 = vld [vmem:[%s4272_s1] sm:$0xff]  ;;  %vm804_vm1 = vcmask 89088   ;;  %s2760_s27 = sand.u32 1, %s2385_s24  }
  0xa2   : > { %2280 = vmatpush.msk.msra.mxu0 %vm808_vm0, %v799_v1  ;;  %v797_v3 = vld [vmem:[%s4271_s0] sm:$0xff]  ;;  %s2278_s10 = sshll.u32 %s2760_s27, 10  ;;  %vm1246_vm3 = vcmask 261120   ;;  %s2279_s14 = sshll.u32 %s2760_s27, 3 }
  0xa3   : > { %v2328_v4 = vld [vmem:[%s4273_s2] ss:$0 sm:$0xff]  ;;  %s2769_s13 = scalar_lea.vmem [#allocation3], %s2278_s10  ;;  %s2283_s15 = sshll.u32 %s2270_s4, 3 }
  0xa4   : > { %827 = vmatpush.msra.mxu0 %v798_v2  ;;  %v2329_v7 = vld [vmem:[%s4274_s3] ss:$0 sm:$0xff]  ;;  %v842_v9 = vld [vmem:[%s2769_s13 + $0x20] sm:$0xff]  ;;  %v840_v11 = vld [vmem:[%s2769_s13 + $0x10] sm:$0xff]  ;;  %s2201_s17 = scalar_lea.hbm %s4277_s6, %s2283_s15  ;;  %s795_s18 = scalar_lea.vmem [#allocation4], %s2279_s14 }
  0xa5   : > { %2281 = vmatmul.msk.f32.vlgmr.msra.gmra.mxu0 %vm804_vm1, %v797_v3  ;;  %v838_v12 = vld [vmem:[%s2769_s13] sm:$0xff]  ;;  %vm970_vm2 = vcmp.ge.f32.partialorder %v842_v9, 0.9  ;;  %vm968_vm4 = vcmp.ge.f32.partialorder %v840_v11, 0.9  ;;  %v843_v15 = vld [vmem:[%s2769_s13 + $0x28] sm:$0xff] }
  0xa6   : > { %vm966_vm5 = vcmp.ge.f32.partialorder %v838_v12, 0.9  ;;  %v841_v19 = vld [vmem:[%s2769_s13 + $0x18] sm:$0xff]  ;;  %v839_v20 = vld [vmem:[%s2769_s13 + $0x8] sm:$0xff]  ;;  %vm971_vm6 = vcmp.ge.f32.partialorder %v843_v15, 0.9 }
  0xa7   : > { %vm969_vm7 = vcmp.ge.f32.partialorder %v841_v19, 0.9  ;;  %vm967_vm8 = vcmp.ge.f32.partialorder %v839_v20, 0.9  ;;  %v846_v26 = vld [vmem:[%s2769_s13 + $0x40] sm:$0xff]  ;;  %v845_v28 = vld [vmem:[%s2769_s13 + $0x38] sm:$0xff] }
  0xa8   : > { %v844_v29 = vld [vmem:[%s2769_s13 + $0x30] sm:$0xff]  ;;  %vm974_vm9 = vcmp.ge.f32.partialorder %v846_v26, 0.9  ;;  %vm973_vm10 = vcmp.ge.f32.partialorder %v845_v28, 0.9  ;;  %v849_v35 = vld [vmem:[%s2769_s13 + $0x58] sm:$0xff] }
  0xa9   : > { %vm972_vm11 = vcmp.ge.f32.partialorder %v844_v29, 0.9  ;;  %v848_v37 = vld [vmem:[%s2769_s13 + $0x50] sm:$0xff]  ;;  %v847_v38 = vld [vmem:[%s2769_s13 + $0x48] sm:$0xff]  ;;  %vm977_vm12 = vcmp.ge.f32.partialorder %v849_v35, 0.9 }
  0xaa   : > { %vm976_vm13 = vcmp.ge.f32.partialorder %v848_v37, 0.9  ;;  %vm975_vm14 = vcmp.ge.f32.partialorder %v847_v38, 0.9  ;;  %v852_v44 = vld [vmem:[%s2769_s13 + $0x70] sm:$0xff]  ;;  %v851_v46 = vld [vmem:[%s2769_s13 + $0x68] sm:$0xff] }
  0xab   : > { %v850_v47 = vld [vmem:[%s2769_s13 + $0x60] sm:$0xff]  ;;  %vm980_vm15 = vcmp.ge.f32.partialorder %v852_v44, 0.9  ;;  %vm979_vm0 = vcmp.ge.f32.partialorder %v851_v46, 0.9  ;;  %v855_v54 = vld [vmem:[%s2769_s13 + $0x88] sm:$0xff] }
  0xac   : > { %vm978_vm1 = vcmp.ge.f32.partialorder %v850_v47, 0.9  ;;  %v854_v56 = vld [vmem:[%s2769_s13 + $0x80] sm:$0xff]  ;;  %v853_v57 = vld [vmem:[%s2769_s13 + $0x78] sm:$0xff]  ;;  %v856_v3 = vld [vmem:[%s2769_s13 + $0x90] sm:$0xff]  ;;  %s2203_s19 = sshll.u32 %s795_s18, 4  ;;  %s2204_s19 = int_to_ptr.vmem [resolvable:$true] %s2203_s19 }
  0xad   : > { %v858_v0 = vld [vmem:[%s2769_s13 + $0xa0] sm:$0xff]  ;;  %v857_v2 = vld [vmem:[%s2769_s13 + $0x98] sm:$0xff]  ;;  %v860_v12 = vld [vmem:[%s2769_s13 + $0xb0] sm:$0xff]  ;;  %s2205_s20 = sshll.u32 %s2201_s17, 4  ;;  %s2191_s21 = scalar_lea.sflag [#allocation5], %s2760_s27  ;;  %s2206_s20 = int_to_ptr.hbm [resolvable:$true] %s2205_s20 }
  0xae   : > { %v861_v9 = vld [vmem:[%s2769_s13 + $0xb8] sm:$0xff]  ;;  %v864_v19 = vld [vmem:[%s2769_s13 + $0xd0] sm:$0xff]  ;;  %v867_v28 = vld [vmem:[%s2769_s13 + $0xe8] sm:$0xff]  ;;  %s2345_s22 = sshra.s32 %s2206_s20, 4  ;;  %s2351_s11 = scalar_lea.hbm %s4277_s6, 16  ;;  %s2346_s22 = int_to_ptr.hbm [resolvable:$true] %s2345_s22 }
  0xaf   : > { %v870_v38 = vld [vmem:[%s2769_s13 + $0x100] sm:$0xff]  ;;  %s2347_s29 = scalar_lea.hbm %s2346_s22, 8  ;;  %p2352_p2 = scmp.lt.s32.totalorder %s2346_s22, %s4277_s6 }
  0xb0   : > { %p2348_p13 = scmp.ne.s32.totalorder %s2346_s22, %s2347_s29  ;;  %p2353_p3 = scmp.lt.s32.totalorder %s2351_s11, %s2347_s29 }
  0xb2   : > { %p2349_p0 = pnand %p2348_p13, %p2472_p6  ;;  %p2354_p4 = por %p2353_p3, %p2352_p2 }
  0xb4   : > { %p2350_p1 = pneg %p2349_p0 }
  0xb6   : > { %p2355_p5 = pnand %p2354_p4, %p2350_p1 }
 0x122   : > { %v829_v5 = vpop.f32.mrf.mxu0 }
 0x123   : > { %v830_v6 = vadd.f32 %v2328_v4, %v829_v5 }
 0x125   : > { %v832_v8 = vmax.f32 %v830_v6, 0.0 }
 0x127   : > { %v2772_v10 = vmul.f32 %v2329_v7, %v832_v8 }
 0x129   : > { %v2777_v13 = vperm.slane %v2772_v10, 0  ;;  %v1095_v50 = vrot.slane %v2772_v10, 1 }
 0x12b   : > { %v1122_v14 = vsel %vm970_vm2, %v2777_v13, 0.0  ;;  %v1120_v17 = vsel %vm968_vm4, %v2777_v13, 0.0  ;;  %v1118_v18 = vsel %vm966_vm5, %v2777_v13, 0.0  ;;  %v1123_v23 = vsel %vm971_vm6, %v2777_v13, 0.0 }
 0x12c   : > { %v1259_v16 = vsel %vm1246_vm3, %v1122_v14, 0.0  ;;  %v1253_v21 = vsel %vm1246_vm3, %v1120_v17, 0.0  ;;  %v1247_v22 = vsel %vm1246_vm3, %v1118_v18, 0.0  ;;  %v1121_v24 = vsel %vm969_vm7, %v2777_v13, 0.0 }
 0x12d   : > { %1260 = vadd.xlane.f32.xlu2 %v1259_v16  ;;  %1254 = vadd.xlane.f32.xlu1 %v1253_v21  ;;  %v1119_v25 = vsel %vm967_vm8, %v2777_v13, 0.0  ;;  %v1262_v27 = vsel %vm1246_vm3, %v1123_v23, 0.0  ;;  %v1256_v30 = vsel %vm1246_vm3, %v1121_v24, 0.0  ;;  %v1126_v32 = vsel %vm974_vm9, %v2777_v13, 0.0  ;;  %v863_v21 = vld [vmem:[%s2769_s13 + $0xc8] sm:$0xff] }
 0x12e   : > { %1248 = vadd.xlane.f32.xlu0 %v1247_v22  ;;  %v1250_v31 = vsel %vm1246_vm3, %v1119_v25, 0.0  ;;  %v1125_v33 = vsel %vm973_vm10, %v2777_v13, 0.0  ;;  %v1124_v34 = vsel %vm972_vm11, %v2777_v13, 0.0  ;;  %v1271_v36 = vsel %vm1246_vm3, %v1126_v32, 0.0  ;;  %v862_v22 = vld [vmem:[%s2769_s13 + $0xc0] sm:$0xff] }
 0x12f   : > { %v1268_v39 = vsel %vm1246_vm3, %v1125_v33, 0.0  ;;  %v1265_v40 = vsel %vm1246_vm3, %v1124_v34, 0.0  ;;  %v1129_v41 = vsel %vm977_vm12, %v2777_v13, 0.0  ;;  %v1128_v42 = vsel %vm976_vm13, %v2777_v13, 0.0 }
 0x130   : > { %v1127_v43 = vsel %vm975_vm14, %v2777_v13, 0.0  ;;  %v1280_v45 = vsel %vm1246_vm3, %v1129_v41, 0.0  ;;  %v1277_v48 = vsel %vm1246_vm3, %v1128_v42, 0.0  ;;  %v1132_v51 = vsel %vm980_vm15, %v2777_v13, 0.0  ;;  %v868_v41 = vld [vmem:[%s2769_s13 + $0xf0] sm:$0xff] }
 0x131   : > { %v1274_v49 = vsel %vm1246_vm3, %v1127_v43, 0.0  ;;  %v1131_v52 = vsel %vm979_vm0, %v2777_v13, 0.0  ;;  %v1130_v53 = vsel %vm978_vm1, %v2777_v13, 0.0  ;;  %v1289_v55 = vsel %vm1246_vm3, %v1132_v51, 0.0  ;;  %v871_v51 = vld [vmem:[%s2769_s13 + $0x108] sm:$0xff] }
 0x132   : > { %v2823_v58 = vperm.slane %v1095_v50, 0  ;;  %v1286_v59 = vsel %vm1246_vm3, %v1131_v52, 0.0  ;;  %v1283_v60 = vsel %vm1246_vm3, %v1130_v53, 0.0  ;;  %vm983_vm2 = vcmp.ge.f32.partialorder %v855_v54, 0.9  ;;  %v872_v50 = vld [vmem:[%s2769_s13 + $0x110] sm:$0xff] }
 0x133   : > { %vm982_vm4 = vcmp.ge.f32.partialorder %v854_v56, 0.9  ;;  %vm981_vm5 = vcmp.ge.f32.partialorder %v853_v57, 0.9  ;;  %vm986_vm6 = vcmp.ge.f32.partialorder %v858_v0, 0.9 }
 0x134   : > { %v1135_v61 = vsel %vm983_vm2, %v2823_v58, 0.0  ;;  %v1134_v62 = vsel %vm982_vm4, %v2823_v58, 0.0  ;;  %v1133_v63 = vsel %vm981_vm5, %v2777_v13, 0.0  ;;  %vm985_vm7 = vcmp.ge.f32.partialorder %v857_v2, 0.9  ;;  %v859_v13 = vld [vmem:[%s2769_s13 + $0xa8] sm:$0xff] }
 0x135   : > { %1263 = vadd.xlane.f32.xlu2 %v1262_v27  ;;  %1257 = vadd.xlane.f32.xlu1 %v1256_v30  ;;  %v1298_v1 = vsel %vm1246_vm3, %v1135_v61, 0.0  ;;  %v1295_v4 = vsel %vm1246_vm3, %v1134_v62, 0.0  ;;  %v1292_v5 = vsel %vm1246_vm3, %v1133_v63, 0.0  ;;  %vm984_vm8 = vcmp.ge.f32.partialorder %v856_v3, 0.9  ;;  %v866_v30 = vld [vmem:[%s2769_s13 + $0xe0] sm:$0xff] }
 0x136   : > { %1251 = vadd.xlane.f32.xlu0 %v1250_v31  ;;  %v1138_v6 = vsel %vm986_vm6, %v2823_v58, 0.0  ;;  %v1137_v7 = vsel %vm985_vm7, %v2823_v58, 0.0  ;;  %v1136_v8 = vsel %vm984_vm8, %v2823_v58, 0.0  ;;  %vm989_vm9 = vcmp.ge.f32.partialorder %v861_v9, 0.9  ;;  %v865_v31 = vld [vmem:[%s2769_s13 + $0xd8] sm:$0xff] }
 0x137   : > { %v1307_v11 = vsel %vm1246_vm3, %v1138_v6, 0.0  ;;  %v1304_v14 = vsel %vm1246_vm3, %v1137_v7, 0.0  ;;  %v1301_v15 = vsel %vm1246_vm3, %v1136_v8, 0.0  ;;  %vm988_vm10 = vcmp.ge.f32.partialorder %v860_v12, 0.9  ;;  %v876_v57 = vld [vmem:[%s2769_s13 + $0x130] sm:$0xff] }
 0x138   : > { %vm987_vm11 = vcmp.ge.f32.partialorder %v859_v13, 0.9  ;;  %v1141_v16 = vsel %vm989_vm9, %v2823_v58, 0.0  ;;  %v1140_v17 = vsel %vm988_vm10, %v2823_v58, 0.0  ;;  %vm992_vm12 = vcmp.ge.f32.partialorder %v864_v19, 0.9 }
 0x139   : > { %v1139_v18 = vsel %vm987_vm11, %v2823_v58, 0.0  ;;  %v1316_v20 = vsel %vm1246_vm3, %v1141_v16, 0.0  ;;  %v1313_v23 = vsel %vm1246_vm3, %v1140_v17, 0.0  ;;  %vm991_vm13 = vcmp.ge.f32.partialorder %v863_v21, 0.9  ;;  %v879_v2 = vld [vmem:[%s2769_s13 + $0x148] sm:$0xff] }
 0x13a   : > { %v1310_v24 = vsel %vm1246_vm3, %v1139_v18, 0.0  ;;  %vm990_vm14 = vcmp.ge.f32.partialorder %v862_v22, 0.9  ;;  %v1144_v25 = vsel %vm992_vm12, %v2823_v58, 0.0  ;;  %v1143_v26 = vsel %vm991_vm13, %v2823_v58, 0.0  ;;  %v882_v12 = vld [vmem:[%s2769_s13 + $0x160] sm:$0xff] }
 0x13b   : > { %v1142_v27 = vsel %vm990_vm14, %v2823_v58, 0.0  ;;  %v1325_v29 = vsel %vm1246_vm3, %v1144_v25, 0.0  ;;  %v1322_v32 = vsel %vm1246_vm3, %v1143_v26, 0.0  ;;  %vm995_vm15 = vcmp.ge.f32.partialorder %v867_v28, 0.9  ;;  %v885_v21 = vld [vmem:[%s2769_s13 + $0x178] sm:$0xff] }
 0x13c   : > { %v1319_v33 = vsel %vm1246_vm3, %v1142_v27, 0.0  ;;  %vm994_vm0 = vcmp.ge.f32.partialorder %v866_v30, 0.9  ;;  %vm993_vm1 = vcmp.ge.f32.partialorder %v865_v31, 0.9  ;;  %v1096_v34 = vrot.slane %v2772_v10, 2 }
 0x13d   : > { %1272 = vadd.xlane.f32.xlu2 %v1271_v36  ;;  %1269 = vadd.xlane.f32.xlu1 %v1268_v39  ;;  %v1147_v35 = vsel %vm995_vm15, %v2823_v58, 0.0  ;;  %v1146_v36 = vsel %vm994_vm0, %v2823_v58, 0.0  ;;  %v1145_v37 = vsel %vm993_vm1, %v2823_v58, 0.0  ;;  %vm998_vm2 = vcmp.ge.f32.partialorder %v870_v38, 0.9 }
 0x13e   : > { %1266 = vadd.xlane.f32.xlu0 %v1265_v40  ;;  %v1334_v39 = vsel %vm1246_vm3, %v1147_v35, 0.0  ;;  %v869_v40 = vld [vmem:[%s2769_s13 + $0xf8] sm:$0xff]  ;;  %v2871_v42 = vperm.slane %v1096_v34, 0  ;;  %v1331_v43 = vsel %vm1246_vm3, %v1146_v36, 0.0  ;;  %v1328_v44 = vsel %vm1246_vm3, %v1145_v37, 0.0  ;;  %v888_v34 = vld [vmem:[%s2769_s13 + $0x190] sm:$0xff] }
 0x13f   : > { %vm997_vm4 = vcmp.ge.f32.partialorder %v869_v40, 0.9  ;;  %vm996_vm5 = vcmp.ge.f32.partialorder %v868_v41, 0.9  ;;  %vm1000_vm7 = vcmp.ge.f32.partialorder %v872_v50, 0.9 }
 0x140   : > { %v1149_v46 = vsel %vm997_vm4, %v2823_v58, 0.0  ;;  %v1148_v47 = vsel %vm996_vm5, %v2823_v58, 0.0  ;;  %vm999_vm8 = vcmp.ge.f32.partialorder %v871_v51, 0.9  ;;  %vm1004_vm9 = vcmp.ge.f32.partialorder %v876_v57, 0.9 }
 0x141   : > { %v1340_v52 = vsel %vm1246_vm3, %v1149_v46, 0.0  ;;  %v1337_v53 = vsel %vm1246_vm3, %v1148_v47, 0.0  ;;  %v1151_v56 = vsel %vm999_vm8, %v2871_v42, 0.0  ;;  %v1156_v63 = vsel %vm1004_vm9, %v2871_v42, 0.0  ;;  %v887_v36 = vld [vmem:[%s2769_s13 + $0x188] sm:$0xff]  ;;  %v886_v37 = vld [vmem:[%s2769_s13 + $0x180] sm:$0xff] }
 0x142   : > { %v1346_v62 = vsel %vm1246_vm3, %v1151_v56, 0.0  ;;  %v1361_v3 = vsel %vm1246_vm3, %v1156_v63, 0.0  ;;  %vm1007_vm12 = vcmp.ge.f32.partialorder %v879_v2, 0.9  ;;  %vm1010_vm15 = vcmp.ge.f32.partialorder %v882_v12, 0.9 }
 0x143   : > { %v1159_v8 = vsel %vm1007_vm12, %v2871_v42, 0.0  ;;  %v1162_v18 = vsel %vm1010_vm15, %v2871_v42, 0.0  ;;  %v1097_v28 = vrot.slane %v2772_v10, 3  ;;  %vm1014_vm8 = vcmp.ge.f32.partialorder %v886_v37, 0.9  ;;  %v891_v47 = vld [vmem:[%s2769_s13 + $0x1a8] sm:$0xff] }
 0x144   : > { %v1370_v13 = vsel %vm1246_vm3, %v1159_v8, 0.0  ;;  %v1379_v22 = vsel %vm1246_vm3, %v1162_v18, 0.0  ;;  %v889_v50 = vld [vmem:[%s2769_s13 + $0x198] sm:$0xff]  ;;  %vm1019_vm9 = vcmp.ge.f32.partialorder %v891_v47, 0.9 }
 0x145   : > { %1281 = vadd.xlane.f32.xlu2 %v1280_v45  ;;  %1278 = vadd.xlane.f32.xlu1 %v1277_v48  ;;  %v1150_v45 = vsel %vm998_vm2, %v2871_v42, 0.0  ;;  %v873_v48 = vld [vmem:[%s2769_s13 + $0x118] sm:$0xff]  ;;  %vm1013_vm2 = vcmp.ge.f32.partialorder %v885_v21, 0.9  ;;  %v2934_v38 = vperm.slane %v1097_v28, 0  ;;  %v1098_v28 = vrot.slane %v2772_v10, 4 }
 0x146   : > { %1275 = vadd.xlane.f32.xlu0 %v1274_v49  ;;  %v1343_v49 = vsel %vm1246_vm3, %v1150_v45, 0.0  ;;  %vm1001_vm6 = vcmp.ge.f32.partialorder %v873_v48, 0.9  ;;  %v1165_v31 = vsel %vm1013_vm2, %v2871_v42, 0.0 }
 0x147   : > { %v1153_v54 = vsel %vm1001_vm6, %v2871_v42, 0.0  ;;  %v1388_v35 = vsel %vm1246_vm3, %v1165_v31, 0.0  ;;  %vm1016_vm6 = vcmp.ge.f32.partialorder %v888_v34, 0.9  ;;  %v1166_v46 = vsel %vm1014_vm8, %v2934_v38, 0.0 }
 0x148   : > { %v1352_v58 = vsel %vm1246_vm3, %v1153_v54, 0.0  ;;  %v1171_v56 = vsel %vm1019_vm9, %v2934_v38, 0.0 }
 0x14d   : > { %1290 = vadd.xlane.f32.xlu2 %v1289_v55  ;;  %1287 = vadd.xlane.f32.xlu1 %v1286_v59  ;;  %v1152_v55 = vsel %vm1000_vm7, %v2871_v42, 0.0  ;;  %v875_v59 = vld [vmem:[%s2769_s13 + $0x128] sm:$0xff]  ;;  %vm1015_vm7 = vcmp.ge.f32.partialorder %v887_v36, 0.9 }
 0x14e   : > { %1284 = vadd.xlane.f32.xlu0 %v1283_v60  ;;  %v874_v60 = vld [vmem:[%s2769_s13 + $0x120] sm:$0xff]  ;;  %v1349_v61 = vsel %vm1246_vm3, %v1152_v55, 0.0  ;;  %vm1003_vm10 = vcmp.ge.f32.partialorder %v875_v59, 0.9  ;;  %v1167_v45 = vsel %vm1015_vm7, %v2934_v38, 0.0  ;;  %v903_v36 = vld [vmem:[%s2769_s13 + $0x208] sm:$0xff] }
 0x14f   : > { %vm1002_vm11 = vcmp.ge.f32.partialorder %v874_v60, 0.9  ;;  %v1155_v0 = vsel %vm1003_vm10, %v2871_v42, 0.0  ;;  %v1394_v51 = vsel %vm1246_vm3, %v1167_v45, 0.0  ;;  %v894_v59 = vld [vmem:[%s2769_s13 + $0x1c0] sm:$0xff]  ;;  %v1406_v60 = vsel %vm1246_vm3, %v1171_v56, 0.0 }
 0x150   : > { %v1358_v6 = vsel %vm1246_vm3, %v1155_v0, 0.0  ;;  %vm1022_vm12 = vcmp.ge.f32.partialorder %v894_v59, 0.9  ;;  %v906_v56 = vld [vmem:[%s2769_s13 + $0x220] sm:$0xff]  ;;  %v904_v59 = vld [vmem:[%s2769_s13 + $0x210] sm:$0xff] }
 0x151   : > { %vm1034_vm9 = vcmp.ge.f32.partialorder %v906_v56, 0.9 }
 0x155   : > { %1299 = vadd.xlane.f32.xlu2 %v1298_v1  ;;  %1296 = vadd.xlane.f32.xlu1 %v1295_v4  ;;  %v1154_v1 = vsel %vm1002_vm11, %v2871_v42, 0.0  ;;  %v878_v4 = vld [vmem:[%s2769_s13 + $0x140] sm:$0xff]  ;;  %vm1017_vm11 = vcmp.ge.f32.partialorder %v889_v50, 0.9 }
 0x156   : > { %1293 = vadd.xlane.f32.xlu0 %v1292_v5  ;;  %v877_v5 = vld [vmem:[%s2769_s13 + $0x138] sm:$0xff]  ;;  %v1355_v7 = vsel %vm1246_vm3, %v1154_v1, 0.0  ;;  %vm1006_vm13 = vcmp.ge.f32.partialorder %v878_v4, 0.9  ;;  %v1174_v4 = vsel %vm1022_vm12, %v2934_v38, 0.0 }
 0x157   : > { %vm1005_vm14 = vcmp.ge.f32.partialorder %v877_v5, 0.9  ;;  %v1158_v9 = vsel %vm1006_vm13, %v2871_v42, 0.0  ;;  %v1415_v8 = vsel %vm1246_vm3, %v1174_v4, 0.0 }
 0x158   : > { %v1367_v16 = vsel %vm1246_vm3, %v1158_v9, 0.0  ;;  %v896_v9 = vld [vmem:[%s2769_s13 + $0x1d0] sm:$0xff] }
 0x15d   : > { %1308 = vadd.xlane.f32.xlu2 %v1307_v11  ;;  %1305 = vadd.xlane.f32.xlu1 %v1304_v14  ;;  %v1157_v11 = vsel %vm1005_vm14, %v2871_v42, 0.0  ;;  %v881_v14 = vld [vmem:[%s2769_s13 + $0x158] sm:$0xff] }
 0x15e   : > { %1302 = vadd.xlane.f32.xlu0 %v1301_v15  ;;  %v880_v15 = vld [vmem:[%s2769_s13 + $0x150] sm:$0xff]  ;;  %v1364_v17 = vsel %vm1246_vm3, %v1157_v11, 0.0  ;;  %vm1009_vm0 = vcmp.ge.f32.partialorder %v881_v14, 0.9  ;;  %v895_v11 = vld [vmem:[%s2769_s13 + $0x1c8] sm:$0xff] }
 0x15f   : > { %vm1008_vm1 = vcmp.ge.f32.partialorder %v880_v15, 0.9  ;;  %v1161_v19 = vsel %vm1009_vm0, %v2871_v42, 0.0  ;;  %vm1024_vm0 = vcmp.ge.f32.partialorder %v896_v9, 0.9  ;;  %v907_v9 = vld [vmem:[%s2769_s13 + $0x228] sm:$0xff] }
 0x160   : > { %v1376_v25 = vsel %vm1246_vm3, %v1161_v19, 0.0  ;;  %v1176_v18 = vsel %vm1024_vm0, %v2934_v38, 0.0 }
 0x165   : > { %1317 = vadd.xlane.f32.xlu2 %v1316_v20  ;;  %1314 = vadd.xlane.f32.xlu1 %v1313_v23  ;;  %v1160_v20 = vsel %vm1008_vm1, %v2871_v42, 0.0  ;;  %v884_v23 = vld [vmem:[%s2769_s13 + $0x170] sm:$0xff]  ;;  %vm1023_vm1 = vcmp.ge.f32.partialorder %v895_v11, 0.9 }
 0x166   : > { %1311 = vadd.xlane.f32.xlu0 %v1310_v24  ;;  %v883_v24 = vld [vmem:[%s2769_s13 + $0x168] sm:$0xff]  ;;  %v1373_v26 = vsel %vm1246_vm3, %v1160_v20, 0.0  ;;  %vm1012_vm4 = vcmp.ge.f32.partialorder %v884_v23, 0.9  ;;  %v1175_v19 = vsel %vm1023_vm1, %v2934_v38, 0.0  ;;  %v900_v20 = vld [vmem:[%s2769_s13 + $0x1f0] sm:$0xff] }
 0x167   : > { %vm1011_vm5 = vcmp.ge.f32.partialorder %v883_v24, 0.9  ;;  %v898_v23 = vld [vmem:[%s2769_s13 + $0x1e0] sm:$0xff]  ;;  %v1421_v24 = vsel %vm1246_vm3, %v1176_v18, 0.0  ;;  %vm1028_vm2 = vcmp.ge.f32.partialorder %v900_v20, 0.9 }
 0x16d   : > { %1326 = vadd.xlane.f32.xlu2 %v1325_v29  ;;  %1323 = vadd.xlane.f32.xlu1 %v1322_v32  ;;  %v1164_v32 = vsel %vm1012_vm4, %v2871_v42, 0.0 }
 0x16e   : > { %1320 = vadd.xlane.f32.xlu0 %v1319_v33  ;;  %v1163_v33 = vsel %vm1011_vm5, %v2871_v42, 0.0  ;;  %vm1026_vm5 = vcmp.ge.f32.partialorder %v898_v23, 0.9 }
 0x16f   : > { %v1382_v40 = vsel %vm1246_vm3, %v1163_v33, 0.0  ;;  %v1180_v33 = vsel %vm1028_vm2, %v2934_v38, 0.0 }
 0x170   : > { %v1433_v37 = vsel %vm1246_vm3, %v1180_v33, 0.0 }
 0x175   : > { %1335 = vadd.xlane.f32.xlu2 %v1334_v39  ;;  %1332 = vadd.xlane.f32.xlu1 %v1331_v43  ;;  %v1385_v39 = vsel %vm1246_vm3, %v1164_v32, 0.0 }
 0x176   : > { %1329 = vadd.xlane.f32.xlu0 %v1328_v44  ;;  %v1168_v44 = vsel %vm1016_vm6, %v2934_v38, 0.0  ;;  %vm1031_vm6 = vcmp.ge.f32.partialorder %v903_v36, 0.9 }
 0x177   : > { %v1397_v48 = vsel %vm1246_vm3, %v1168_v44, 0.0  ;;  %v3012_v44 = vperm.slane %v1098_v28, 0 }
 0x179   : > { %v1183_v50 = vsel %vm1031_vm6, %v3012_v44, 0.0 }
 0x17d   : > { %1344 = vadd.xlane.f32.xlu2 %v1343_v49  ;;  %1341 = vadd.xlane.f32.xlu1 %v1340_v52  ;;  %v890_v49 = vld [vmem:[%s2769_s13 + $0x1a0] sm:$0xff]  ;;  %v1391_v52 = vsel %vm1246_vm3, %v1166_v46, 0.0 }
 0x17e   : > { %1338 = vadd.xlane.f32.xlu0 %v1337_v53  ;;  %vm1018_vm10 = vcmp.ge.f32.partialorder %v890_v49, 0.9 }
 0x17f   : > { %v1170_v57 = vsel %vm1018_vm10, %v2934_v38, 0.0 }
 0x180   : > { %v1403_v63 = vsel %vm1246_vm3, %v1170_v57, 0.0  ;;  %v1442_v57 = vsel %vm1246_vm3, %v1183_v50, 0.0  ;;  %v914_v50 = vld [vmem:[%s2769_s13 + $0x260] sm:$0xff] }
 0x185   : > { %1353 = vadd.xlane.f32.xlu2 %v1352_v58  ;;  %1350 = vadd.xlane.f32.xlu1 %v1349_v61  ;;  %v1169_v58 = vsel %vm1017_vm11, %v2934_v38, 0.0  ;;  %v893_v61 = vld [vmem:[%s2769_s13 + $0x1b8] sm:$0xff]  ;;  %vm1032_vm11 = vcmp.ge.f32.partialorder %v904_v59, 0.9 }
 0x186   : > { %1347 = vadd.xlane.f32.xlu0 %v1346_v62  ;;  %v892_v62 = vld [vmem:[%s2769_s13 + $0x1b0] sm:$0xff]  ;;  %v1400_v0 = vsel %vm1246_vm3, %v1169_v58, 0.0  ;;  %vm1021_vm13 = vcmp.ge.f32.partialorder %v893_v61, 0.9  ;;  %v905_v58 = vld [vmem:[%s2769_s13 + $0x218] sm:$0xff] }
 0x187   : > { %vm1020_vm14 = vcmp.ge.f32.partialorder %v892_v62, 0.9  ;;  %v1173_v5 = vsel %vm1021_vm13, %v2934_v38, 0.0  ;;  %vm1033_vm10 = vcmp.ge.f32.partialorder %v905_v58, 0.9  ;;  %v1099_v58 = vrot.slane %v2772_v10, 5 }
 0x188   : > { %v1412_v12 = vsel %vm1246_vm3, %v1173_v5, 0.0  ;;  %v1185_v4 = vsel %vm1033_vm10, %v3012_v44, 0.0  ;;  %v1184_v5 = vsel %vm1032_vm11, %v3012_v44, 0.0 }
 0x189   : > { %v1448_v11 = vsel %vm1246_vm3, %v1185_v4, 0.0 }
 0x18d   : > { %1362 = vadd.xlane.f32.xlu2 %v1361_v3  ;;  %1359 = vadd.xlane.f32.xlu1 %v1358_v6  ;;  %v1172_v6 = vsel %vm1020_vm14, %v2934_v38, 0.0  ;;  %vm1035_vm14 = vcmp.ge.f32.partialorder %v907_v9, 0.9  ;;  %v3090_v9 = vperm.slane %v1099_v58, 0 }
 0x18e   : > { %1356 = vadd.xlane.f32.xlu0 %v1355_v7  ;;  %v897_v7 = vld [vmem:[%s2769_s13 + $0x1d8] sm:$0xff] }
 0x18f   : > { %vm1025_vm15 = vcmp.ge.f32.partialorder %v897_v7, 0.9 }
 0x195   : > { %1371 = vadd.xlane.f32.xlu2 %v1370_v13  ;;  %1368 = vadd.xlane.f32.xlu1 %v1367_v16  ;;  %v1409_v13 = vsel %vm1246_vm3, %v1172_v6, 0.0  ;;  %v909_v6 = vld [vmem:[%s2769_s13 + $0x238] sm:$0xff] }
 0x196   : > { %1365 = vadd.xlane.f32.xlu0 %v1364_v17  ;;  %v1177_v17 = vsel %vm1025_vm15, %v2934_v38, 0.0  ;;  %vm1037_vm12 = vcmp.ge.f32.partialorder %v909_v6, 0.9 }
 0x197   : > { %v1424_v21 = vsel %vm1246_vm3, %v1177_v17, 0.0 }
 0x19d   : > { %1380 = vadd.xlane.f32.xlu2 %v1379_v22  ;;  %1377 = vadd.xlane.f32.xlu1 %v1376_v25  ;;  %v899_v22 = vld [vmem:[%s2769_s13 + $0x1e8] sm:$0xff]  ;;  %v1418_v25 = vsel %vm1246_vm3, %v1175_v19, 0.0  ;;  %v1189_v19 = vsel %vm1037_vm12, %v3012_v44, 0.0 }
 0x19e   : > { %1374 = vadd.xlane.f32.xlu0 %v1373_v26  ;;  %vm1027_vm4 = vcmp.ge.f32.partialorder %v899_v22, 0.9  ;;  %v912_v22 = vld [vmem:[%s2769_s13 + $0x250] sm:$0xff]  ;;  %v1460_v23 = vsel %vm1246_vm3, %v1189_v19, 0.0 }
 0x19f   : > { %v1179_v34 = vsel %vm1027_vm4, %v2934_v38, 0.0  ;;  %vm1040_vm15 = vcmp.ge.f32.partialorder %v912_v22, 0.9  ;;  %vm1042_vm4 = vcmp.ge.f32.partialorder %v914_v50, 0.9 }
 0x1a0   : > { %v2920_v27 = vpop.xlane.xlu2 %1260  ;;  %v2923_v29 = vpop.xlane.xlu1 %1254  ;;  %v1430_v45 = vsel %vm1246_vm3, %v1179_v34, 0.0 }
 0x1a1   : > { %v2925_v30 = vpop.xlane.xlu0 %1248 }
 0x1a5   : > { %1389 = vadd.xlane.f32.xlu2 %v1388_v35  ;;  %1386 = vadd.xlane.f32.xlu1 %v1385_v39  ;;  %v1178_v35 = vsel %vm1026_vm5, %v2934_v38, 0.0  ;;  %v902_v39 = vld [vmem:[%s2769_s13 + $0x200] sm:$0xff] }
 0x1a6   : > { %1383 = vadd.xlane.f32.xlu0 %v1382_v40  ;;  %v901_v40 = vld [vmem:[%s2769_s13 + $0x1f8] sm:$0xff]  ;;  %v1427_v46 = vsel %vm1246_vm3, %v1178_v35, 0.0  ;;  %vm1030_vm7 = vcmp.ge.f32.partialorder %v902_v39, 0.9 }
 0x1a7   : > { %vm1029_vm8 = vcmp.ge.f32.partialorder %v901_v40, 0.9 }
 0x1a8   : > { %v2938_v41 = vpop.xlane.xlu2 %1263  ;;  %v2940_v42 = vpop.xlane.xlu1 %1257 }
 0x1a9   : > { %v2942_v43 = vpop.xlane.xlu0 %1251 }
 0x1ad   : > { %1398 = vadd.xlane.f32.xlu2 %v1397_v48  ;;  %1395 = vadd.xlane.f32.xlu1 %v1394_v51  ;;  %v1182_v51 = vsel %vm1030_vm7, %v3012_v44, 0.0 }
 0x1ae   : > { %1392 = vadd.xlane.f32.xlu0 %v1391_v52  ;;  %v1181_v52 = vsel %vm1029_vm8, %v2934_v38, 0.0 }
 0x1af   : > { %v1436_v61 = vsel %vm1246_vm3, %v1181_v52, 0.0 }
 0x1b0   : > { %v2953_v53 = vpop.xlane.xlu2 %1272  ;;  %v2955_v54 = vpop.xlane.xlu1 %1269 }
 0x1b1   : > { %4292 = vst [vmem:[#allocation7_spill] sm:$0xff] %v2953_v53  ;;  %v2957_v55 = vpop.xlane.xlu0 %1266 }
 0x1b2   : > { %4293 = vst [vmem:[#allocation8_spill] sm:$0xff] %v2955_v54 }
 0x1b5   : > { %1407 = vadd.xlane.f32.xlu2 %v1406_v60  ;;  %1404 = vadd.xlane.f32.xlu1 %v1403_v63  ;;  %v1439_v60 = vsel %vm1246_vm3, %v1182_v51, 0.0  ;;  %v913_v51 = vld [vmem:[%s2769_s13 + $0x258] sm:$0xff] }
 0x1b6   : > { %1401 = vadd.xlane.f32.xlu0 %v1400_v0  ;;  %v1186_v0 = vsel %vm1034_vm9, %v3012_v44, 0.0  ;;  %vm1041_vm5 = vcmp.ge.f32.partialorder %v913_v51, 0.9 }
 0x1b7   : > { %v1451_v7 = vsel %vm1246_vm3, %v1186_v0, 0.0  ;;  %v1194_v0 = vsel %vm1042_vm4, %v3012_v44, 0.0  ;;  %v1193_v4 = vsel %vm1041_vm5, %v3012_v44, 0.0 }
 0x1b8   : > { %v2968_v1 = vpop.xlane.xlu2 %1281  ;;  %v2970_v2 = vpop.xlane.xlu1 %1278 }
 0x1b9   : > { %4294 = vst [vmem:[#allocation9_spill] sm:$0xff] %v2968_v1  ;;  %v2972_v3 = vpop.xlane.xlu0 %1275 }
 0x1ba   : > { %4295 = vst [vmem:[#allocation10_spill] sm:$0xff] %v2970_v2 }
 0x1bb   : > { %4296 = vst [vmem:[#allocation11_spill] sm:$0xff] %v2972_v3 }
 0x1bd   : > { %1416 = vadd.xlane.f32.xlu2 %v1415_v8  ;;  %1413 = vadd.xlane.f32.xlu1 %v1412_v12  ;;  %v908_v8 = vld [vmem:[%s2769_s13 + $0x230] sm:$0xff]  ;;  %v1445_v12 = vsel %vm1246_vm3, %v1184_v5, 0.0  ;;  %v918_v5 = vld [vmem:[%s2769_s13 + $0x280] sm:$0xff] }
 0x1be   : > { %1410 = vadd.xlane.f32.xlu0 %v1409_v13  ;;  %vm1036_vm13 = vcmp.ge.f32.partialorder %v908_v8, 0.9  ;;  %v916_v8 = vld [vmem:[%s2769_s13 + $0x270] sm:$0xff]  ;;  %vm1046_vm6 = vcmp.ge.f32.partialorder %v918_v5, 0.9 }
 0x1bf   : > { %v1188_v20 = vsel %vm1036_vm13, %v3012_v44, 0.0  ;;  %vm1044_vm8 = vcmp.ge.f32.partialorder %v916_v8, 0.9  ;;  %v1198_v22 = vsel %vm1046_vm6, %v3090_v9, 0.0 }
 0x1c0   : > { %v2983_v14 = vpop.xlane.xlu2 %1290  ;;  %v2985_v15 = vpop.xlane.xlu1 %1287  ;;  %v1457_v28 = vsel %vm1246_vm3, %v1188_v20, 0.0 }
 0x1c1   : > { %4297 = vst [vmem:[#allocation12_spill] sm:$0xff] %v2983_v14  ;;  %v2987_v16 = vpop.xlane.xlu0 %1284 }
 0x1c2   : > { %4298 = vst [vmem:[#allocation13_spill] sm:$0xff] %v2985_v15 }
 0x1c3   : > { %4299 = vst [vmem:[#allocation14_spill] sm:$0xff] %v2987_v16 }
 0x1c5   : > { %1425 = vadd.xlane.f32.xlu2 %v1424_v21  ;;  %1422 = vadd.xlane.f32.xlu1 %v1421_v24  ;;  %v1187_v21 = vsel %vm1035_vm14, %v3012_v44, 0.0  ;;  %v911_v24 = vld [vmem:[%s2769_s13 + $0x248] sm:$0xff] }
 0x1c6   : > { %1419 = vadd.xlane.f32.xlu0 %v1418_v25  ;;  %v910_v25 = vld [vmem:[%s2769_s13 + $0x240] sm:$0xff]  ;;  %v1454_v33 = vsel %vm1246_vm3, %v1187_v21, 0.0  ;;  %vm1039_vm0 = vcmp.ge.f32.partialorder %v911_v24, 0.9  ;;  %v1196_v24 = vsel %vm1044_vm8, %v3012_v44, 0.0 }
 0x1c7   : > { %vm1038_vm1 = vcmp.ge.f32.partialorder %v910_v25, 0.9  ;;  %v1191_v39 = vsel %vm1039_vm0, %v3012_v44, 0.0  ;;  %v921_v25 = vld [vmem:[%s2769_s13 + $0x298] sm:$0xff] }
 0x1c8   : > { %v2998_v26 = vpop.xlane.xlu2 %1299  ;;  %v3001_v31 = vpop.xlane.xlu1 %1296  ;;  %v1190_v40 = vsel %vm1038_vm1, %v3012_v44, 0.0  ;;  %v1466_v52 = vsel %vm1246_vm3, %v1191_v39, 0.0  ;;  %vm1049_vm9 = vcmp.ge.f32.partialorder %v921_v25, 0.9  ;;  %v926_v25 = vld [vmem:[%s2769_s13 + $0x2c0] sm:$0xff] }
 0x1c9   : > { %v3003_v32 = vpop.xlane.xlu0 %1293  ;;  %v1463_v56 = vsel %vm1246_vm3, %v1190_v40, 0.0  ;;  %v1481_v40 = vsel %vm1246_vm3, %v1196_v24, 0.0  ;;  %v1201_v50 = vsel %vm1049_vm9, %v3090_v9, 0.0  ;;  %vm1054_vm0 = vcmp.ge.f32.partialorder %v926_v25, 0.9 }
 0x1ca   : > { %4300 = vst [vmem:[#allocation15_spill] sm:$0xff] %v3003_v32  ;;  %v1496_v58 = vsel %vm1246_vm3, %v1201_v50, 0.0 }
 0x1cd   : > { %1434 = vadd.xlane.f32.xlu2 %v1433_v37  ;;  %1431 = vadd.xlane.f32.xlu1 %v1430_v45  ;;  %v1192_v37 = vsel %vm1040_vm15, %v3012_v44, 0.0  ;;  %v915_v45 = vld [vmem:[%s2769_s13 + $0x268] sm:$0xff] }
 0x1ce   : > { %1428 = vadd.xlane.f32.xlu0 %v1427_v46  ;;  %v1469_v46 = vsel %vm1246_vm3, %v1192_v37, 0.0  ;;  %vm1043_vm2 = vcmp.ge.f32.partialorder %v915_v45, 0.9  ;;  %v919_v37 = vld [vmem:[%s2769_s13 + $0x288] sm:$0xff] }
 0x1cf   : > { %vm1047_vm11 = vcmp.ge.f32.partialorder %v919_v37, 0.9 }
 0x1d0   : > { %v3016_v47 = vpop.xlane.xlu2 %1308  ;;  %v3018_v48 = vpop.xlane.xlu1 %1305 }
 0x1d1   : > { %v3020_v49 = vpop.xlane.xlu0 %1302 }
 0x1d5   : > { %1443 = vadd.xlane.f32.xlu2 %v1442_v57  ;;  %1440 = vadd.xlane.f32.xlu1 %v1439_v60 }
 0x1d6   : > { %1437 = vadd.xlane.f32.xlu0 %v1436_v61  ;;  %v1195_v61 = vsel %vm1043_vm2, %v3012_v44, 0.0 }
 0x1d7   : > { %v1478_v6 = vsel %vm1246_vm3, %v1195_v61, 0.0  ;;  %v923_v61 = vld [vmem:[%s2769_s13 + $0x2a8] sm:$0xff] }
 0x1d8   : > { %v3031_v62 = vpop.xlane.xlu2 %1317  ;;  %v3033_v38 = vpop.xlane.xlu1 %1314  ;;  %vm1051_vm13 = vcmp.ge.f32.partialorder %v923_v61, 0.9 }
 0x1d9   : > { %4301 = vst [vmem:[#allocation16_spill] sm:$0xff] %v3031_v62  ;;  %v3035_v63 = vpop.xlane.xlu0 %1311 }
 0x1dd   : > { %1452 = vadd.xlane.f32.xlu2 %v1451_v7  ;;  %1449 = vadd.xlane.f32.xlu1 %v1448_v11  ;;  %v917_v7 = vld [vmem:[%s2769_s13 + $0x278] sm:$0xff]  ;;  %v1475_v11 = vsel %vm1246_vm3, %v1194_v0, 0.0  ;;  %v922_v0 = vld [vmem:[%s2769_s13 + $0x2a0] sm:$0xff] }
 0x1de   : > { %1446 = vadd.xlane.f32.xlu0 %v1445_v12  ;;  %v1472_v12 = vsel %vm1246_vm3, %v1193_v4, 0.0  ;;  %vm1045_vm7 = vcmp.ge.f32.partialorder %v917_v7, 0.9  ;;  %vm1050_vm14 = vcmp.ge.f32.partialorder %v922_v0, 0.9  ;;  %v929_v0 = vld [vmem:[%s2769_s13 + $0x2d8] sm:$0xff] }
 0x1df   : > { %vm1057_vm4 = vcmp.ge.f32.partialorder %v929_v0, 0.9  ;;  %v1100_v0 = vrot.slane %v2772_v10, 6 }
 0x1e0   : > { %v3046_v13 = vpop.xlane.xlu2 %1326  ;;  %v3048_v17 = vpop.xlane.xlu1 %1323  ;;  %v1209_v25 = vsel %vm1057_vm4, %v3090_v9, 0.0 }
 0x1e1   : > { %4302 = vst [vmem:[#allocation17_spill] sm:$0xff] %v3046_v13  ;;  %v3050_v18 = vpop.xlane.xlu0 %1320 }
 0x1e2   : > { %4303 = vst [vmem:[#allocation18_spill] sm:$0xff] %v3048_v17 }
 0x1e3   : > { %4304 = vst [vmem:[#allocation19_spill] sm:$0xff] %v3050_v18 }
 0x1e5   : > { %1461 = vadd.xlane.f32.xlu2 %v1460_v23  ;;  %1458 = vadd.xlane.f32.xlu1 %v1457_v28  ;;  %v1197_v23 = vsel %vm1045_vm7, %v3012_v44, 0.0  ;;  %v1487_v28 = vsel %vm1246_vm3, %v1198_v22, 0.0  ;;  %v1202_v22 = vsel %vm1050_vm14, %v3090_v9, 0.0 }
 0x1e6   : > { %1455 = vadd.xlane.f32.xlu0 %v1454_v33  ;;  %v920_v33 = vld [vmem:[%s2769_s13 + $0x290] sm:$0xff]  ;;  %v1484_v39 = vsel %vm1246_vm3, %v1197_v23, 0.0  ;;  %v927_v23 = vld [vmem:[%s2769_s13 + $0x2c8] sm:$0xff]  ;;  %v1499_v37 = vsel %vm1246_vm3, %v1202_v22, 0.0 }
 0x1e7   : > { %vm1048_vm10 = vcmp.ge.f32.partialorder %v920_v33, 0.9  ;;  %vm1055_vm15 = vcmp.ge.f32.partialorder %v927_v23, 0.9 }
 0x1e8   : > { %v3061_v34 = vpop.xlane.xlu2 %1335  ;;  %v3063_v35 = vpop.xlane.xlu1 %1332  ;;  %v1200_v51 = vsel %vm1048_vm10, %v3090_v9, 0.0 }
 0x1e9   : > { %4305 = vst [vmem:[#allocation20_spill] sm:$0xff] %v3061_v34  ;;  %v3065_v36 = vpop.xlane.xlu0 %1329  ;;  %v1493_v4 = vsel %vm1246_vm3, %v1200_v51, 0.0  ;;  %v1207_v51 = vsel %vm1055_vm15, %v3090_v9, 0.0 }
 0x1ea   : > { %4306 = vst [vmem:[#allocation21_spill] sm:$0xff] %v3063_v35  ;;  %v1514_v61 = vsel %vm1246_vm3, %v1207_v51, 0.0  ;;  %v932_v51 = vld [vmem:[%s2769_s13 + $0x2f0] sm:$0xff] }
 0x1eb   : > { %4307 = vst [vmem:[#allocation22_spill] sm:$0xff] %v3065_v36  ;;  %vm1060_vm7 = vcmp.ge.f32.partialorder %v932_v51, 0.9  ;;  %v934_v51 = vld [vmem:[%s2769_s13 + $0x300] sm:$0xff] }
 0x1ed   : > { %1470 = vadd.xlane.f32.xlu2 %v1469_v46  ;;  %1467 = vadd.xlane.f32.xlu1 %v1466_v52  ;;  %v1199_v52 = vsel %vm1047_vm11, %v3090_v9, 0.0  ;;  %vm1062_vm11 = vcmp.ge.f32.partialorder %v934_v51, 0.9 }
 0x1ee   : > { %1464 = vadd.xlane.f32.xlu0 %v1463_v56  ;;  %v924_v56 = vld [vmem:[%s2769_s13 + $0x2b0] sm:$0xff]  ;;  %v1490_v5 = vsel %vm1246_vm3, %v1199_v52, 0.0  ;;  %v1206_v52 = vsel %vm1054_vm0, %v3090_v9, 0.0 }
 0x1ef   : > { %vm1052_vm12 = vcmp.ge.f32.partialorder %v924_v56, 0.9 }
 0x1f0   : > { %v3076_v57 = vpop.xlane.xlu2 %1344  ;;  %v3079_v59 = vpop.xlane.xlu1 %1341 }
 0x1f1   : > { %4308 = vst [vmem:[#allocation23_spill] sm:$0xff] %v3079_v59  ;;  %v3081_v60 = vpop.xlane.xlu0 %1338 }
 0x1f2   : > { %4309 = vst [vmem:[#allocation24_spill] sm:$0xff] %v3081_v60 }
 0x1f5   : > { %1479 = vadd.xlane.f32.xlu2 %v1478_v6  ;;  %1476 = vadd.xlane.f32.xlu1 %v1475_v11  ;;  %v1204_v11 = vsel %vm1052_vm12, %v3090_v9, 0.0 }
 0x1f6   : > { %1473 = vadd.xlane.f32.xlu0 %v1472_v12  ;;  %v1203_v12 = vsel %vm1051_vm13, %v3090_v9, 0.0  ;;  %v1505_v24 = vsel %vm1246_vm3, %v1204_v11, 0.0 }
 0x1f7   : > { %v1502_v33 = vsel %vm1246_vm3, %v1203_v12, 0.0 }
 0x1f8   : > { %v3094_v19 = vpop.xlane.xlu2 %1353  ;;  %v3096_v20 = vpop.xlane.xlu1 %1350 }
 0x1f9   : > { %v3098_v21 = vpop.xlane.xlu0 %1347 }
 0x1fd   : > { %1488 = vadd.xlane.f32.xlu2 %v1487_v28  ;;  %1485 = vadd.xlane.f32.xlu1 %v1484_v39  ;;  %v925_v28 = vld [vmem:[%s2769_s13 + $0x2b8] sm:$0xff] }
 0x1fe   : > { %1482 = vadd.xlane.f32.xlu0 %v1481_v40  ;;  %vm1053_vm1 = vcmp.ge.f32.partialorder %v925_v28, 0.9 }
 0x1ff   : > { %v1205_v56 = vsel %vm1053_vm1, %v3090_v9, 0.0 }
 0x200   : > { %v3109_v45 = vpop.xlane.xlu2 %1362  ;;  %v3111_v44 = vpop.xlane.xlu1 %1359  ;;  %v1508_v11 = vsel %vm1246_vm3, %v1205_v56, 0.0  ;;  %v1520_v56 = vsel %vm1246_vm3, %v1209_v25, 0.0 }
 0x201   : > { %4310 = vst [vmem:[#allocation25_spill] sm:$0xff] %v3109_v45  ;;  %v3113_v46 = vpop.xlane.xlu0 %1356 }
 0x202   : > { %4311 = vst [vmem:[#allocation26_spill] sm:$0xff] %v3111_v44 }
 0x205   : > { %1497 = vadd.xlane.f32.xlu2 %v1496_v58  ;;  %1494 = vadd.xlane.f32.xlu1 %v1493_v4  ;;  %v930_v58 = vld [vmem:[%s2769_s13 + $0x2e0] sm:$0xff]  ;;  %v928_v4 = vld [vmem:[%s2769_s13 + $0x2d0] sm:$0xff] }
 0x206   : > { %1491 = vadd.xlane.f32.xlu0 %v1490_v5  ;;  %v1511_v5 = vsel %vm1246_vm3, %v1206_v52, 0.0  ;;  %vm1058_vm2 = vcmp.ge.f32.partialorder %v930_v58, 0.9  ;;  %vm1056_vm5 = vcmp.ge.f32.partialorder %v928_v4, 0.9  ;;  %v931_v52 = vld [vmem:[%s2769_s13 + $0x2e8] sm:$0xff] }
 0x207   : > { %v1208_v28 = vsel %vm1056_vm5, %v3090_v9, 0.0  ;;  %vm1059_vm8 = vcmp.ge.f32.partialorder %v931_v52, 0.9  ;;  %v3183_v52 = vperm.slane %v1100_v0, 0 }
 0x208   : > { %v3124_v6 = vpop.xlane.xlu2 %1371  ;;  %v3126_v7 = vpop.xlane.xlu1 %1368  ;;  %v1517_v58 = vsel %vm1246_vm3, %v1208_v28, 0.0  ;;  %v1211_v25 = vsel %vm1059_vm8, %v3090_v9, 0.0  ;;  %v936_v28 = vld [vmem:[%s2769_s13 + $0x310] sm:$0xff] }
 0x209   : > { %4312 = vst [vmem:[#allocation27_spill] sm:$0xff] %v3124_v6  ;;  %v3128_v8 = vpop.xlane.xlu0 %1365  ;;  %vm1064_vm9 = vcmp.ge.f32.partialorder %v936_v28, 0.9  ;;  %v937_v28 = vld [vmem:[%s2769_s13 + $0x318] sm:$0xff]  ;;  %v1894_v6 = vlaneseq }
 0x20a   : > { %4313 = vst [vmem:[#allocation28_spill] sm:$0xff] %v3126_v7  ;;  %v1216_v0 = vsel %vm1064_vm9, %v3183_v52, 0.0  ;;  %vm1065_vm14 = vcmp.ge.f32.partialorder %v937_v28, 0.9 }
 0x20b   : > { %4314 = vst [vmem:[#allocation29_spill] sm:$0xff] %v3128_v8  ;;  %v3403_v45 = vand.u32 127, %v1894_v6 }
 0x20d   : > { %1506 = vadd.xlane.f32.xlu2 %v1505_v24  ;;  %1503 = vadd.xlane.f32.xlu1 %v1502_v33  ;;  %v1210_v24 = vsel %vm1058_vm2, %v3090_v9, 0.0  ;;  %v933_v33 = vld [vmem:[%s2769_s13 + $0x2f8] sm:$0xff]  ;;  %v3408_v59 = vadd.s32 4294967256, %v3403_v45  ;;  %v3411_v60 = vadd.s32 4294967288, %v3403_v45  ;;  %v3414_v34 = vadd.s32 4294967280, %v3403_v45 }
 0x20e   : > { %1500 = vadd.xlane.f32.xlu0 %v1499_v37  ;;  %v1523_v37 = vsel %vm1246_vm3, %v1210_v24, 0.0  ;;  %vm1061_vm6 = vcmp.ge.f32.partialorder %v933_v33, 0.9  ;;  %v1212_v24 = vsel %vm1060_vm7, %v3090_v9, 0.0  ;;  %v935_v33 = vld [vmem:[%s2769_s13 + $0x308] sm:$0xff]  ;;  %v3417_v35 = vadd.s32 4294967272, %v3403_v45 }
 0x20f   : > { %vm1063_vm10 = vcmp.ge.f32.partialorder %v935_v33, 0.9  ;;  %4367 = vst [vmem:[#allocation82_spill] sm:$0xff] %v3414_v34  ;;  %v3420_v36 = vadd.s32 4294967264, %v3403_v45  ;;  %v3425_v13 = vadd.s32 4294967240, %v3403_v45  ;;  %v3428_v17 = vadd.s32 4294967248, %v3403_v45 }
 0x210   : > { %v3139_v39 = vpop.xlane.xlu2 %1380  ;;  %v3141_v40 = vpop.xlane.xlu1 %1377  ;;  %4368 = vst [vmem:[#allocation83_spill] sm:$0xff] %v3417_v35  ;;  %v3433_v32 = vadd.s32 4294967224, %v3403_v45  ;;  %v3436_v14 = vadd.s32 4294967232, %v3403_v45  ;;  %v3439_v15 = vadd.s32 4294967200, %v3403_v45  ;;  %v3446_v2 = vadd.s32 4294967208, %v3403_v45 }
 0x211   : > { %4315 = vst [vmem:[#allocation30_spill] sm:$0xff] %v3139_v39  ;;  %v3143_v50 = vpop.xlane.xlu0 %1374  ;;  %v942_v39 = vld [vmem:[%s2769_s13 + $0x340] sm:$0xff] }
 0x212   : > { %4316 = vst [vmem:[#allocation31_spill] sm:$0xff] %v3141_v40  ;;  %vm1070_vm15 = vcmp.ge.f32.partialorder %v942_v39, 0.9 }
 0x213   : > { %4317 = vst [vmem:[#allocation32_spill] sm:$0xff] %v3143_v50 }
 0x214   : > { %4369 = vst [vmem:[#allocation84_spill] sm:$0xff] %v3420_v36 }
 0x215   : > { %1515 = vadd.xlane.f32.xlu2 %v1514_v61  ;;  %1512 = vadd.xlane.f32.xlu1 %v1511_v5  ;;  %4370 = vst [vmem:[#allocation85_spill] sm:$0xff] %v3439_v15 }
 0x216   : > { %1509 = vadd.xlane.f32.xlu0 %v1508_v11  ;;  %v1213_v11 = vsel %vm1061_vm6, %v3090_v9, 0.0  ;;  %4371 = vst [vmem:[#allocation86_spill] sm:$0xff] %v3446_v2 }
 0x218   : > { %v3154_v12 = vpop.xlane.xlu2 %1389  ;;  %v3156_v22 = vpop.xlane.xlu1 %1386 }
 0x219   : > { %4318 = vst [vmem:[#allocation33_spill] sm:$0xff] %v3154_v12  ;;  %v3158_v23 = vpop.xlane.xlu0 %1383 }
 0x21a   : > { %4319 = vst [vmem:[#allocation34_spill] sm:$0xff] %v3156_v22  ;;  %v939_v22 = vld [vmem:[%s2769_s13 + $0x328] sm:$0xff] }
 0x21b   : > { %4320 = vst [vmem:[#allocation35_spill] sm:$0xff] %v3158_v23  ;;  %vm1067_vm12 = vcmp.ge.f32.partialorder %v939_v22, 0.9  ;;  %v940_v22 = vld [vmem:[%s2769_s13 + $0x330] sm:$0xff] }
 0x21c   : > { %v1219_v23 = vsel %vm1067_vm12, %v3183_v52, 0.0  ;;  %vm1068_vm1 = vcmp.ge.f32.partialorder %v940_v22, 0.9  ;;  %v2395_v22 = vmov 0  }
 0x21d   : > { %1524 = vadd.xlane.f32.xlu2 %v1523_v37  ;;  %1521 = vadd.xlane.f32.xlu1 %v1520_v56  ;;  %v1532_v37 = vsel %vm1246_vm3, %v1213_v11, 0.0  ;;  %v1529_v56 = vsel %vm1246_vm3, %v1212_v24, 0.0  ;;  %v1214_v24 = vsel %vm1062_vm11, %v3183_v52, 0.0 }
 0x21e   : > { %1518 = vadd.xlane.f32.xlu0 %v1517_v58  ;;  %v1526_v58 = vsel %vm1246_vm3, %v1211_v25, 0.0  ;;  %v1541_v25 = vsel %vm1246_vm3, %v1216_v0, 0.0  ;;  %v1535_v51 = vsel %vm1246_vm3, %v1214_v24, 0.0  ;;  %v1550_v24 = vsel %vm1246_vm3, %v1219_v23, 0.0 }
 0x21f   : > { %2327 = vset.pattern.permute.xlu0 %v2395_v22 }
 0x220   : > { %v3169_v61 = vpop.xlane.xlu2 %1398  ;;  %v3172_v4 = vpop.xlane.xlu1 %1395 }
 0x221   : > { %v3174_v5 = vpop.xlane.xlu0 %1392 }
 0x225   : > { %1533 = vadd.xlane.f32.xlu2 %v1532_v37  ;;  %1530 = vadd.xlane.f32.xlu1 %v1529_v56  ;;  %v1215_v37 = vsel %vm1063_vm10, %v3183_v52, 0.0  ;;  %v938_v56 = vld [vmem:[%s2769_s13 + $0x320] sm:$0xff] }
 0x226   : > { %1527 = vadd.xlane.f32.xlu0 %v1526_v58  ;;  %v1538_v33 = vsel %vm1246_vm3, %v1215_v37, 0.0  ;;  %vm1066_vm13 = vcmp.ge.f32.partialorder %v938_v56, 0.9  ;;  %v1217_v37 = vsel %vm1065_vm14, %v3183_v52, 0.0 }
 0x227   : > { %v1544_v28 = vsel %vm1246_vm3, %v1217_v37, 0.0 }
 0x228   : > { %v3187_v9 = vpop.xlane.xlu2 %1407  ;;  %v3189_v11 = vpop.xlane.xlu1 %1404 }
 0x229   : > { %4321 = vst [vmem:[#allocation36_spill] sm:$0xff] %v3187_v9  ;;  %v3191_v12 = vpop.xlane.xlu0 %1401 }
 0x22d   : > { %1542 = vadd.xlane.f32.xlu2 %v1541_v25  ;;  %1539 = vadd.xlane.f32.xlu1 %v1538_v33  ;;  %v1218_v25 = vsel %vm1066_vm13, %v3183_v52, 0.0  ;;  %v941_v33 = vld [vmem:[%s2769_s13 + $0x338] sm:$0xff] }
 0x22e   : > { %1536 = vadd.xlane.f32.xlu0 %v1535_v51  ;;  %v1547_v56 = vsel %vm1246_vm3, %v1218_v25, 0.0  ;;  %vm1069_vm0 = vcmp.ge.f32.partialorder %v941_v33, 0.9  ;;  %v1220_v25 = vsel %vm1068_vm1, %v3183_v52, 0.0 }
 0x22f   : > { %v1553_v33 = vsel %vm1246_vm3, %v1220_v25, 0.0 }
 0x230   : > { %v3202_v58 = vpop.xlane.xlu2 %1416  ;;  %v3204_v9 = vpop.xlane.xlu1 %1413 }
 0x231   : > { %4322 = vst [vmem:[#allocation37_spill] sm:$0xff] %v3202_v58  ;;  %v3206_v0 = vpop.xlane.xlu0 %1410 }
 0x232   : > { %4323 = vst [vmem:[#allocation38_spill] sm:$0xff] %v3204_v9  ;;  %v1222_v9 = vsel %vm1070_vm15, %v3183_v52, 0.0 }
 0x233   : > { %4324 = vst [vmem:[#allocation39_spill] sm:$0xff] %v3206_v0  ;;  %v945_v0 = vld [vmem:[%s2769_s13 + $0x358] sm:$0xff]  ;;  %v1559_v37 = vsel %vm1246_vm3, %v1222_v9, 0.0 }
 0x234   : > { %vm1073_vm2 = vcmp.ge.f32.partialorder %v945_v0, 0.9  ;;  %v947_v0 = vld [vmem:[%s2769_s13 + $0x368] sm:$0xff] }
 0x235   : > { %1551 = vadd.xlane.f32.xlu2 %v1550_v24  ;;  %1548 = vadd.xlane.f32.xlu1 %v1547_v56  ;;  %v1221_v24 = vsel %vm1069_vm0, %v3183_v52, 0.0  ;;  %v944_v56 = vld [vmem:[%s2769_s13 + $0x350] sm:$0xff]  ;;  %vm1075_vm7 = vcmp.ge.f32.partialorder %v947_v0, 0.9  ;;  %v950_v0 = vld [vmem:[%s2769_s13 + $0x380] sm:$0xff] }
 0x236   : > { %1545 = vadd.xlane.f32.xlu0 %v1544_v28  ;;  %v943_v28 = vld [vmem:[%s2769_s13 + $0x348] sm:$0xff]  ;;  %v1556_v39 = vsel %vm1246_vm3, %v1221_v24, 0.0  ;;  %vm1072_vm4 = vcmp.ge.f32.partialorder %v944_v56, 0.9  ;;  %v946_v56 = vld [vmem:[%s2769_s13 + $0x360] sm:$0xff] }
 0x237   : > { %vm1071_vm5 = vcmp.ge.f32.partialorder %v943_v28, 0.9  ;;  %v1224_v24 = vsel %vm1072_vm4, %v3183_v52, 0.0  ;;  %vm1074_vm8 = vcmp.ge.f32.partialorder %v946_v56, 0.9 }
 0x238   : > { %v3217_v51 = vpop.xlane.xlu2 %1425  ;;  %v3219_v58 = vpop.xlane.xlu1 %1422  ;;  %v1223_v25 = vsel %vm1071_vm5, %v3183_v52, 0.0  ;;  %v1565_v28 = vsel %vm1246_vm3, %v1224_v24, 0.0  ;;  %v1227_v24 = vsel %vm1075_vm7, %v3183_v52, 0.0  ;;  %vm1078_vm10 = vcmp.ge.f32.partialorder %v950_v0, 0.9 }
 0x239   : > { %4325 = vst [vmem:[#allocation40_spill] sm:$0xff] %v3217_v51  ;;  %v3221_v23 = vpop.xlane.xlu0 %1419  ;;  %v1562_v22 = vsel %vm1246_vm3, %v1223_v25, 0.0  ;;  %v951_v25 = vld [vmem:[%s2769_s13 + $0x388] sm:$0xff] }
 0x23a   : > { %4326 = vst [vmem:[#allocation41_spill] sm:$0xff] %v3219_v58  ;;  %vm1079_vm9 = vcmp.ge.f32.partialorder %v951_v25, 0.9 }
 0x23b   : > { %4327 = vst [vmem:[#allocation42_spill] sm:$0xff] %v3221_v23  ;;  %v1226_v23 = vsel %vm1074_vm8, %v3183_v52, 0.0 }
 0x23d   : > { %1560 = vadd.xlane.f32.xlu2 %v1559_v37  ;;  %1557 = vadd.xlane.f32.xlu1 %v1556_v39  ;;  %v1225_v37 = vsel %vm1073_vm2, %v3183_v52, 0.0  ;;  %v948_v39 = vld [vmem:[%s2769_s13 + $0x370] sm:$0xff] }
 0x23e   : > { %1554 = vadd.xlane.f32.xlu0 %v1553_v33  ;;  %v1568_v33 = vsel %vm1246_vm3, %v1225_v37, 0.0  ;;  %vm1076_vm6 = vcmp.ge.f32.partialorder %v948_v39, 0.9 }
 0x240   : > { %v3232_v51 = vpop.xlane.xlu2 %1434  ;;  %v3234_v9 = vpop.xlane.xlu1 %1431 }
 0x241   : > { %4328 = vst [vmem:[#allocation43_spill] sm:$0xff] %v3232_v51  ;;  %v3236_v58 = vpop.xlane.xlu0 %1428 }
 0x242   : > { %4329 = vst [vmem:[#allocation44_spill] sm:$0xff] %v3234_v9  ;;  %v1101_v9 = vrot.slane %v2772_v10, 7  ;;  %v1574_v10 = vsel %vm1246_vm3, %v1227_v24, 0.0 }
 0x243   : > { %4330 = vst [vmem:[#allocation45_spill] sm:$0xff] %v3236_v58 }
 0x244   : > { %v3260_v56 = vperm.slane %v1101_v9, 0 }
 0x245   : > { %1569 = vadd.xlane.f32.xlu2 %v1568_v33  ;;  %1566 = vadd.xlane.f32.xlu1 %v1565_v28  ;;  %v1228_v33 = vsel %vm1076_vm6, %v3183_v52, 0.0  ;;  %v1571_v28 = vsel %vm1246_vm3, %v1226_v23, 0.0  ;;  %v952_v23 = vld [vmem:[%s2769_s13 + $0x390] sm:$0xff] }
 0x246   : > { %1563 = vadd.xlane.f32.xlu0 %v1562_v22  ;;  %v1577_v39 = vsel %vm1246_vm3, %v1228_v33, 0.0  ;;  %v1231_v33 = vsel %vm1079_vm9, %v3260_v56, 0.0  ;;  %v1230_v9 = vsel %vm1078_vm10, %v3260_v56, 0.0  ;;  %vm1080_vm12 = vcmp.ge.f32.partialorder %v952_v23, 0.9 }
 0x247   : > { %v1586_v24 = vsel %vm1246_vm3, %v1231_v33, 0.0  ;;  %v1583_v25 = vsel %vm1246_vm3, %v1230_v9, 0.0 }
 0x248   : > { %v3247_v51 = vpop.xlane.xlu2 %1443  ;;  %v3250_v58 = vpop.xlane.xlu1 %1440 }
 0x249   : > { %4331 = vst [vmem:[#allocation46_spill] sm:$0xff] %v3247_v51  ;;  %v3252_v37 = vpop.xlane.xlu0 %1437 }
 0x24a   : > { %4332 = vst [vmem:[#allocation47_spill] sm:$0xff] %v3250_v58 }
 0x24b   : > { %4333 = vst [vmem:[#allocation48_spill] sm:$0xff] %v3252_v37  ;;  %v965_v37 = vld [vmem:[%s2769_s13 + $0x3f8] sm:$0xff] }
 0x24c   : > { %vm1093_vm9 = vcmp.ge.f32.partialorder %v965_v37, 0.9 }
 0x24d   : > { %1578 = vadd.xlane.f32.xlu2 %v1577_v39  ;;  %1575 = vadd.xlane.f32.xlu1 %v1574_v10  ;;  %v953_v39 = vld [vmem:[%s2769_s13 + $0x398] sm:$0xff] }
 0x24e   : > { %1572 = vadd.xlane.f32.xlu0 %v1571_v28  ;;  %vm1081_vm11 = vcmp.ge.f32.partialorder %v953_v39, 0.9  ;;  %v2330_v39 = vld [vmem:[#allocation2] ss:$0 sm:$0xff] }
 0x250   : > { %v3264_v22 = vpop.xlane.xlu2 %1452  ;;  %v3266_v51 = vpop.xlane.xlu1 %1449 }
 0x251   : > { %4334 = vst [vmem:[#allocation49_spill] sm:$0xff] %v3264_v22  ;;  %v3268_v58 = vpop.xlane.xlu0 %1446  ;;  %v1233_v22 = vsel %vm1081_vm11, %v3260_v56, 0.0  ;;  %vm1903_vm11 = vcmask 195712  }
 0x252   : > { %4335 = vst [vmem:[#allocation50_spill] sm:$0xff] %v3266_v51  ;;  %v1232_v51 = vsel %vm1080_vm12, %v3260_v56, 0.0  ;;  %v1592_v33 = vsel %vm1246_vm3, %v1233_v22, 0.0  ;;  %vm1907_vm12 = vcmask 261312  }
 0x253   : > { %4336 = vst [vmem:[#allocation51_spill] sm:$0xff] %v3268_v58  ;;  %v955_v58 = vld [vmem:[%s2769_s13 + $0x3a8] sm:$0xff]  ;;  %v1589_v9 = vsel %vm1246_vm3, %v1232_v51, 0.0 }
 0x254   : > { %vm1083_vm13 = vcmp.ge.f32.partialorder %v955_v58, 0.9 }
 0x255   : > { %1587 = vadd.xlane.f32.xlu2 %v1586_v24  ;;  %1584 = vadd.xlane.f32.xlu1 %v1583_v25  ;;  %v954_v24 = vld [vmem:[%s2769_s13 + $0x3a0] sm:$0xff] }
 0x256   : > { %vm1082_vm14 = vcmp.ge.f32.partialorder %v954_v24, 0.9 }
 0x257   : > { %v1234_v22 = vsel %vm1082_vm14, %v3260_v56, 0.0  ;;  %vm1915_vm14 = vcmask 392512  }
 0x258   : > { %v3276_v0 = vpop.xlane.xlu2 %1461  ;;  %v3278_v10 = vpop.xlane.xlu1 %1458  ;;  %v1595_v58 = vsel %vm1246_vm3, %v1234_v22, 0.0 }
 0x259   : > { %4337 = vst [vmem:[#allocation52_spill] sm:$0xff] %v3276_v0  ;;  %v3280_v28 = vpop.xlane.xlu0 %1455 }
 0x25a   : > { %4338 = vst [vmem:[#allocation53_spill] sm:$0xff] %v3278_v10  ;;  %v1235_v10 = vsel %vm1083_vm13, %v3260_v56, 0.0  ;;  %vm1911_vm13 = vcmask 326912  }
 0x25b   : > { %4339 = vst [vmem:[#allocation54_spill] sm:$0xff] %v3280_v28  ;;  %v1598_v51 = vsel %vm1246_vm3, %v1235_v10, 0.0  ;;  %v959_v10 = vld [vmem:[%s2769_s13 + $0x3c8] sm:$0xff]  ;;  %v958_v28 = vld [vmem:[%s2769_s13 + $0x3c0] sm:$0xff] }
 0x25c   : > { %vm1087_vm1 = vcmp.ge.f32.partialorder %v959_v10, 0.9  ;;  %vm1086_vm2 = vcmp.ge.f32.partialorder %v958_v28, 0.9 }
 0x25d   : > { %1593 = vadd.xlane.f32.xlu2 %v1592_v33  ;;  %1590 = vadd.xlane.f32.xlu1 %v1589_v9  ;;  %v957_v33 = vld [vmem:[%s2769_s13 + $0x3b8] sm:$0xff]  ;;  %v956_v9 = vld [vmem:[%s2769_s13 + $0x3b0] sm:$0xff] }
 0x25e   : > { %vm1085_vm15 = vcmp.ge.f32.partialorder %v957_v33, 0.9  ;;  %vm1084_vm0 = vcmp.ge.f32.partialorder %v956_v9, 0.9 }
 0x260   : > { %v3288_v23 = vpop.xlane.xlu2 %1470  ;;  %v3290_v25 = vpop.xlane.xlu1 %1467 }
 0x261   : > { %4340 = vst [vmem:[#allocation55_spill] sm:$0xff] %v3288_v23  ;;  %v3292_v0 = vpop.xlane.xlu0 %1464 }
 0x262   : > { %4341 = vst [vmem:[#allocation56_spill] sm:$0xff] %v3290_v25  ;;  %1635 = vperm.xlu0 %2327, %v2330_v39   ;;  %v1237_v39 = vsel %vm1085_vm15, %v3260_v56, 0.0  ;;  %vm1919_vm15 = vcmask 458112  }
 0x263   : > { %4342 = vst [vmem:[#allocation57_spill] sm:$0xff] %v3292_v0  ;;  %v1236_v0 = vsel %vm1084_vm0, %v3260_v56, 0.0  ;;  %vm1923_vm0 = vcmask 523712  }
 0x264   : > { %v1601_v22 = vsel %vm1246_vm3, %v1236_v0, 0.0 }
 0x265   : > { %1599 = vadd.xlane.f32.xlu2 %v1598_v51  ;;  %1596 = vadd.xlane.f32.xlu1 %v1595_v58  ;;  %v1604_v51 = vsel %vm1246_vm3, %v1237_v39, 0.0  ;;  %v962_v39 = vld [vmem:[%s2769_s13 + $0x3e0] sm:$0xff] }
 0x266   : > { %vm1090_vm4 = vcmp.ge.f32.partialorder %v962_v39, 0.9 }
 0x268   : > { %v3300_v24 = vpop.xlane.xlu2 %1479  ;;  %v3302_v23 = vpop.xlane.xlu1 %1476 }
 0x269   : > { %4343 = vst [vmem:[#allocation58_spill] sm:$0xff] %v3300_v24  ;;  %v3304_v25 = vpop.xlane.xlu0 %1473  ;;  %v1239_v24 = vsel %vm1087_vm1, %v3260_v56, 0.0  ;;  %vm1927_vm1 = vcmask 589312  }
 0x26a   : > { %4344 = vst [vmem:[#allocation59_spill] sm:$0xff] %v3302_v23  ;;  %v1238_v23 = vsel %vm1086_vm2, %v3260_v56, 0.0  ;;  %vm1931_vm2 = vcmask 654912  }
 0x26b   : > { %4345 = vst [vmem:[#allocation60_spill] sm:$0xff] %v3304_v25  ;;  %v961_v25 = vld [vmem:[%s2769_s13 + $0x3d8] sm:$0xff]  ;;  %v1607_v0 = vsel %vm1246_vm3, %v1238_v23, 0.0  ;;  %v963_v23 = vld [vmem:[%s2769_s13 + $0x3e8] sm:$0xff] }
 0x26c   : > { %vm1089_vm5 = vcmp.ge.f32.partialorder %v961_v25, 0.9  ;;  %vm1091_vm7 = vcmp.ge.f32.partialorder %v963_v23, 0.9 }
 0x26d   : > { %1605 = vadd.xlane.f32.xlu2 %v1604_v51  ;;  %1602 = vadd.xlane.f32.xlu1 %v1601_v22  ;;  %v1610_v51 = vsel %vm1246_vm3, %v1239_v24, 0.0  ;;  %v949_v24 = vld [vmem:[%s2769_s13 + $0x378] sm:$0xff] }
 0x26e   : > { %vm1077_vm6 = vcmp.ge.f32.partialorder %v949_v24, 0.9 }
 0x270   : > { %v3312_v33 = vpop.xlane.xlu2 %1488  ;;  %v3314_v9 = vpop.xlane.xlu1 %1485 }
 0x271   : > { %4346 = vst [vmem:[#allocation61_spill] sm:$0xff] %v3312_v33  ;;  %v3316_v58 = vpop.xlane.xlu0 %1482  ;;  %v1242_v33 = vsel %vm1090_vm4, %v3260_v56, 0.0  ;;  %vm1935_vm4 = vcmask 720512  }
 0x272   : > { %4347 = vst [vmem:[#allocation62_spill] sm:$0xff] %v3314_v9  ;;  %v1241_v9 = vsel %vm1089_vm5, %v3260_v56, 0.0  ;;  %vm1939_vm5 = vcmask 786112  }
 0x273   : > { %4348 = vst [vmem:[#allocation63_spill] sm:$0xff] %v3316_v58  ;;  %v1616_v25 = vsel %vm1246_vm3, %v1241_v9, 0.0  ;;  %v960_v58 = vld [vmem:[%s2769_s13 + $0x3d0] sm:$0xff] }
 0x274   : > { %vm1088_vm8 = vcmp.ge.f32.partialorder %v960_v58, 0.9 }
 0x275   : > { %1611 = vadd.xlane.f32.xlu2 %v1610_v51  ;;  %1608 = vadd.xlane.f32.xlu1 %v1607_v0  ;;  %v1619_v51 = vsel %vm1246_vm3, %v1242_v33, 0.0  ;;  %v1240_v23 = vsel %vm1088_vm8, %v3260_v56, 0.0  ;;  %vm1951_vm8 = vcmask 982912  }
 0x278   : > { %v3324_v28 = vpop.xlane.xlu2 %1497  ;;  %v3326_v10 = vpop.xlane.xlu1 %1494 }
 0x279   : > { %4349 = vst [vmem:[#allocation64_spill] sm:$0xff] %v3324_v28  ;;  %v3328_v22 = vpop.xlane.xlu0 %1491 }
 0x27a   : > { %4350 = vst [vmem:[#allocation65_spill] sm:$0xff] %v3326_v10  ;;  %v1229_v10 = vsel %vm1077_vm6, %v3183_v52, 0.0  ;;  %vm1943_vm6 = vcmask 851712  }
 0x27b   : > { %4351 = vst [vmem:[#allocation66_spill] sm:$0xff] %v3328_v22  ;;  %v1243_v22 = vsel %vm1091_vm7, %v3260_v56, 0.0  ;;  %v1580_v33 = vsel %vm1246_vm3, %v1229_v10, 0.0  ;;  %vm1947_vm7 = vcmask 917312  }
 0x27c   : > { %v1622_v9 = vsel %vm1246_vm3, %v1243_v22, 0.0 }
 0x27d   : > { %1620 = vadd.xlane.f32.xlu2 %v1619_v51  ;;  %1617 = vadd.xlane.f32.xlu1 %v1616_v25  ;;  %v964_v51 = vld [vmem:[%s2769_s13 + $0x3f0] sm:$0xff] }
 0x27e   : > { %vm1092_vm10 = vcmp.ge.f32.partialorder %v964_v51, 0.9 }
 0x27f   : > { %v1244_v10 = vsel %vm1092_vm10, %v3260_v56, 0.0  ;;  %vm2174_vm10 = vcmask 1041409  }
 0x280   : > { %v3336_v39 = vpop.xlane.xlu2 %1506  ;;  %v3338_v0 = vpop.xlane.xlu1 %1503  ;;  %v1625_v37 = vsel %vm1246_vm3, %v1244_v10, 0.0 }
 0x281   : > { %4352 = vst [vmem:[#allocation67_spill] sm:$0xff] %v3336_v39  ;;  %v3340_v28 = vpop.xlane.xlu0 %1500  ;;  %v1245_v39 = vsel %vm1093_vm9, %v3260_v56, 0.0  ;;  %vm1955_vm9 = vcmask 1048512  }
 0x282   : > { %4353 = vst [vmem:[#allocation68_spill] sm:$0xff] %v3338_v0  ;;  %v1628_v58 = vsel %vm1246_vm3, %v1245_v39, 0.0 }
 0x283   : > { %4354 = vst [vmem:[#allocation69_spill] sm:$0xff] %v3340_v28 }
 0x285   : > { %1581 = vadd.xlane.f32.xlu2 %v1580_v33  ;;  %1623 = vadd.xlane.f32.xlu1 %v1622_v9  ;;  %v1613_v33 = vsel %vm1246_vm3, %v1240_v23, 0.0  ;;  %vm1899_vm3 = vcmask 130112  }
 0x288   : > { %v3349_v24 = vpop.xlane.xlu2 %1515  ;;  %v3352_v25 = vpop.xlane.xlu1 %1512 }
 0x289   : > { %4355 = vst [vmem:[#allocation70_spill] sm:$0xff] %v3349_v24  ;;  %v3354_v52 = vpop.xlane.xlu0 %1509 }
 0x28a   : > { %4356 = vst [vmem:[#allocation71_spill] sm:$0xff] %v3352_v25 }
 0x28b   : > { %4357 = vst [vmem:[#allocation72_spill] sm:$0xff] %v3354_v52 }
 0x28c   : > { %1614 = vadd.xlane.f32.xlu0 %v1613_v33 }
 0x28d   : > { %1629 = vadd.xlane.f32.xlu2 %v1628_v58  ;;  %1626 = vadd.xlane.f32.xlu1 %v1625_v37 }
 0x290   : > { %v3361_v22 = vpop.xlane.xlu2 %1524  ;;  %v3363_v51 = vpop.xlane.xlu1 %1521 }
 0x291   : > { %4358 = vst [vmem:[#allocation73_spill] sm:$0xff] %v3361_v22  ;;  %v3365_v9 = vpop.xlane.xlu0 %1518 }
 0x292   : > { %4359 = vst [vmem:[#allocation74_spill] sm:$0xff] %v3363_v51 }
 0x293   : > { %4360 = vst [vmem:[#allocation75_spill] sm:$0xff] %v3365_v9 }
 0x298   : > { %v3367_v24 = vpop.xlane.xlu2 %1533  ;;  %v3369_v25 = vpop.xlane.xlu1 %1530 }
 0x299   : > { %4361 = vst [vmem:[#allocation76_spill] sm:$0xff] %v3367_v24  ;;  %v3371_v56 = vpop.xlane.xlu0 %1527 }
 0x29a   : > { %4362 = vst [vmem:[#allocation77_spill] sm:$0xff] %v3369_v25 }
 0x29b   : > { %4363 = vst [vmem:[#allocation78_spill] sm:$0xff] %v3371_v56 }
 0x2a0   : > { %v3373_v23 = vpop.xlane.xlu2 %1542  ;;  %v3375_v33 = vpop.xlane.xlu1 %1539 }
 0x2a1   : > { %v3377_v39 = vpop.xlane.xlu0 %1536 }
 0x2a8   : > { %v3379_v10 = vpop.xlane.xlu2 %1551  ;;  %v3381_v58 = vpop.xlane.xlu1 %1548 }
 0x2a9   : > { %v3383_v37 = vpop.xlane.xlu0 %1545 }
 0x2b0   : > { %v3385_v22 = vpop.xlane.xlu2 %1560  ;;  %v3387_v51 = vpop.xlane.xlu1 %1557 }
 0x2b1   : > { %v3389_v24 = vpop.xlane.xlu0 %1554 }
 0x2b8   : > { %v3391_v25 = vpop.xlane.xlu2 %1569  ;;  %v3393_v56 = vpop.xlane.xlu1 %1566 }
 0x2b9   : > { %v3399_v0 = vpop.xlane.xlu0 %1563 }
 0x2c0   : > { %v3395_v9 = vpop.xlane.xlu2 %1578  ;;  %v3397_v52 = vpop.xlane.xlu1 %1575 }
 0x2c1   : > { %4364 = vst [vmem:[#allocation79_spill] sm:$0xff] %v3395_v9  ;;  %v3401_v50 = vpop.xlane.xlu0 %1572 }
 0x2c2   : > { %4365 = vst [vmem:[#allocation80_spill] sm:$0xff] %v3397_v52 }
 0x2c3   : > { %4366 = vst [vmem:[#allocation81_spill] sm:$0xff] %v3401_v50 }
 0x2c8   : > { %v1588_v28 = vpop.xlane.xlu2 %1587  ;;  %v1585_v40 = vpop.xlane.xlu1 %1584 }
 0x2d0   : > { %v1594_v7 = vpop.xlane.xlu2 %1593  ;;  %v1591_v8 = vpop.xlane.xlu1 %1590 }
 0x2d4   : > { %v3405_v44 = vpop.permute.xlu0 %1635 }
 0x2d5   : > { %v1638_v6 = vadd.f32 %v3405_v44, %v2925_v30  ;;  %v1639_v62 = vadd.f32 %v3405_v44, %v2942_v43  ;;  %v1640_v16 = vadd.f32 %v3405_v44, %v2923_v29  ;;  %v1641_v1 = vadd.f32 %v3405_v44, %v2940_v42 }
 0x2d6   : > { %v3449_v43 = vadd.s32 4294967216, %v3403_v45  ;;  %v3453_v3 = vadd.f32 %v3405_v44, %v2920_v27  ;;  %v1654_v53 = vadd.f32 %v3405_v44, %v3001_v31  ;;  %v1655_v29 = vadd.f32 %v3405_v44, %v2998_v26 }
 0x2d7   : > { %v1656_v42 = vadd.f32 %v3405_v44, %v3020_v49  ;;  %v1657_v54 = vadd.f32 %v3405_v44, %v3018_v48  ;;  %v1670_v27 = vadd.f32 %v3405_v44, %v3076_v57  ;;  %v1896_v2 = vperm.slane %v1638_v6, %v3403_v45 }
 0x2d8   : > { %v1600_v18 = vpop.xlane.xlu2 %1599  ;;  %v1597_v30 = vpop.xlane.xlu1 %1596  ;;  %4372 = vst [vmem:[#allocation87_spill] sm:$0xff] %v3449_v43  ;;  %v3465_v43 = vadd.f32 %v3405_v44, %v3016_v47  ;;  %v1671_v26 = vadd.f32 %v3405_v44, %v3098_v21  ;;  %v1672_v49 = vadd.f32 %v3405_v44, %v3096_v20  ;;  %v1898_v48 = vperm.slane %v1639_v62, %v3411_v60 }
 0x2d9   : > { %v3471_v31 = vadd.f32 %v3405_v44, %v1600_v18  ;;  %v3480_v47 = vadd.f32 %v3405_v44, %v3094_v19  ;;  %v3484_v57 = vadd.f32 %v3405_v44, %v3113_v46  ;;  %v1686_v18 = vadd.f32 %v3405_v44, %v3174_v5 }
 0x2da   : > { %v1687_v21 = vadd.f32 %v3405_v44, %v3172_v4  ;;  %v1688_v20 = vadd.f32 %v3405_v44, %v3169_v61  ;;  %v1902_v62 = vperm.slane %v1640_v16, %v3414_v34  ;;  %v1957_v6 = vperm.slane %v1654_v53, %v3403_v45 }
 0x2db   : > { %v1958_v19 = vperm.slane %v1655_v29, %v3411_v60  ;;  %v3497_v9 = vadd.f32 %v3405_v44, %v3191_v12  ;;  %v3501_v46 = vadd.f32 %v3405_v44, %v3189_v11  ;;  %v1750_v5 = vadd.f32 %v3405_v44, %v1585_v40 }
 0x2dc   : > { %v1900_v4 = vsel %vm1899_vm3, %v1898_v48, %v1896_v2  ;;  %v2152_v61 = vperm.slane %v3471_v31, %v3408_v59  ;;  %v1751_v16 = vadd.f32 %v3405_v44, %v1588_v28  ;;  %v1752_v53 = vadd.f32 %v3405_v44, %v1591_v8 }
 0x2dd   : > { %v1753_v29 = vadd.f32 %v3405_v44, %v1594_v7  ;;  %v1754_v12 = vadd.f32 %v3405_v44, %v1597_v30  ;;  %v1960_v52 = vperm.slane %v1656_v42, %v3414_v34  ;;  %v1988_v11 = vperm.slane %v1670_v27, %v3403_v45 }
 0x2de   : > { %v1989_v40 = vperm.slane %v1671_v26, %v3411_v60  ;;  %v1904_v2 = vsel %vm1903_vm11, %v1902_v62, %v1900_v4  ;;  %v1959_v48 = vsel %vm1899_vm3, %v1958_v19, %v1957_v6  ;;  %v2019_v28 = vperm.slane %v1686_v18, %v3403_v45 }
 0x2df   : > { %v2020_v8 = vperm.slane %v1687_v21, %v3411_v60  ;;  %v1906_v7 = vperm.slane %v1641_v1, %v3417_v35  ;;  %v1910_v30 = vperm.slane %v3453_v3, %v3420_v36  ;;  %v1962_v42 = vperm.slane %v1657_v54, %v3417_v35 }
 0x2e0   : > { %v1606_v15 = vpop.xlane.xlu2 %1605  ;;  %v1603_v50 = vpop.xlane.xlu1 %1602  ;;  %v2143_v27 = vperm.slane %v1750_v5, %v3403_v45  ;;  %v1964_v26 = vperm.slane %v3465_v43, %v3420_v36  ;;  %v1991_v62 = vperm.slane %v1672_v49, %v3414_v34  ;;  %v2144_v6 = vperm.slane %v1751_v16, %v3411_v60 }
 0x2e1   : > { %v2146_v18 = vperm.slane %v1752_v53, %v3414_v34  ;;  %v1908_v21 = vsel %vm1907_vm12, %v1906_v7, %v1904_v2  ;;  %v1961_v1 = vsel %vm1903_vm11, %v1960_v52, %v1959_v48  ;;  %v1993_v3 = vperm.slane %v3480_v47, %v3417_v35 }
 0x2e2   : > { %v2022_v54 = vperm.slane %v1688_v20, %v3414_v34  ;;  %v1990_v19 = vsel %vm1899_vm3, %v1989_v40, %v1988_v11  ;;  %v2021_v43 = vsel %vm1899_vm3, %v2020_v8, %v2019_v28  ;;  %v2145_v49 = vsel %vm1899_vm3, %v2144_v6, %v2143_v27 }
 0x2e3   : > { %v2150_v5 = vperm.slane %v1754_v12, %v3420_v36  ;;  %v1995_v4 = vperm.slane %v3484_v57, %v3420_v36  ;;  %v2147_v16 = vsel %vm1903_vm11, %v2146_v18, %v2145_v49  ;;  %v2148_v52 = vperm.slane %v1753_v29, %v3417_v35 }
 0x2e4   : > { %v1643_v47 = vadd.f32 %v3405_v44, %v2938_v41  ;;  %v1912_v20 = vsel %vm1911_vm13, %v1910_v30, %v1908_v21  ;;  %v1963_v53 = vsel %vm1907_vm12, %v1962_v42, %v1961_v1  ;;  %v1659_v11 = vadd.f32 %v3405_v44, %v3035_v63 }
 0x2e5   : > { %v1756_v40 = vadd.f32 %v3405_v44, %v1603_v50  ;;  %v1992_v57 = vsel %vm1903_vm11, %v1991_v62, %v1990_v19  ;;  %v2023_v2 = vsel %vm1903_vm11, %v2022_v54, %v2021_v43  ;;  %v2149_v29 = vsel %vm1907_vm12, %v2148_v52, %v2147_v16 }
 0x2e6   : > { %v1757_v48 = vadd.f32 %v3405_v44, %v1606_v15  ;;  %v2151_v28 = vsel %vm1911_vm13, %v2150_v5, %v2149_v29  ;;  %v1644_v8 = vadd.f32 %v3405_v44, %v2957_v55  ;;  %v1965_v7 = vsel %vm1911_vm13, %v1964_v26, %v1963_v53 }
 0x2e7   : > { %v2154_v63 = vperm.slane %v1756_v40, %v3428_v17  ;;  %v2024_v30 = vperm.slane %v3497_v9, %v3417_v35  ;;  %v1660_v42 = vadd.f32 %v3405_v44, %v3033_v38  ;;  %v1914_v15 = vperm.slane %v1643_v47, %v3408_v59 }
 0x2e8   : > { %v1612_v12 = vpop.xlane.xlu2 %1611  ;;  %v1609_v41 = vpop.xlane.xlu1 %1608  ;;  %v1994_v27 = vsel %vm1907_vm12, %v1993_v3, %v1992_v57  ;;  %v2026_v62 = vperm.slane %v3501_v46, %v3420_v36  ;;  %v1966_v55 = vperm.slane %v1659_v11, %v3408_v59  ;;  %v2156_v18 = vperm.slane %v1757_v48, %v3425_v13 }
 0x2e9   : > { %v1758_v50 = vadd.f32 %v3405_v44, %v1609_v41  ;;  %v3568_v6 = vadd.f32 %v3405_v44, %v1612_v12  ;;  %v2025_v26 = vsel %vm1907_vm12, %v2024_v30, %v2023_v2  ;;  %v1916_v9 = vsel %vm1915_vm14, %v1914_v15, %v1912_v20 }
 0x2ea   : > { %v2153_v38 = vsel %vm1915_vm14, %v2152_v61, %v2151_v28  ;;  %v1918_v21 = vperm.slane %v1644_v8, %v3428_v17  ;;  %v1967_v46 = vsel %vm1915_vm14, %v1966_v55, %v1965_v7  ;;  %v1968_v54 = vperm.slane %v1660_v42, %v3428_v17  ;;  %v4373_v7 = vld [vmem:[#allocation81_spill] sm:$0xff]  ;;  %v4374_v42 = vld [vmem:[#allocation80_spill] sm:$0xff] }
 0x2eb   : > { %v2155_v1 = vsel %vm1919_vm15, %v2154_v63, %v2153_v38  ;;  %v2158_v3 = vperm.slane %v1758_v50, %v3436_v14  ;;  %v1734_v19 = vadd.f32 %v3405_v44, %v3377_v39  ;;  %v1735_v43 = vadd.f32 %v3405_v44, %v3375_v33 }
 0x2ec   : > { %v1736_v31 = vadd.f32 %v3405_v44, %v3373_v23  ;;  %v3589_v61 = vsel %vm1911_vm13, %v1995_v4, %v1994_v27  ;;  %v3592_v49 = vsel %vm1911_vm13, %v2026_v62, %v2025_v26  ;;  %v3595_v5 = vsel %vm1919_vm15, %v1918_v21, %v1916_v9  ;;  %v4375_v62 = vld [vmem:[#allocation85_spill] sm:$0xff]  ;;  %v4378_v9 = vld [vmem:[#allocation86_spill] sm:$0xff] }
 0x2ed   : > { %v2160_v16 = vperm.slane %v3568_v6, %v3433_v32  ;;  %v3600_v39 = vsel %vm1919_vm15, %v1968_v54, %v1967_v46  ;;  %v2157_v33 = vsel %vm1923_vm0, %v2156_v18, %v2155_v1  ;;  %v3604_v23 = vadd.s32 4294967192, %v3403_v45  ;;  %v4376_v6 = vld [vmem:[#allocation79_spill] sm:$0xff] }
 0x2ee   : > { %v1737_v4 = vadd.f32 %v3405_v44, %v3383_v37  ;;  %v2159_v20 = vsel %vm1927_vm1, %v2158_v3, %v2157_v33  ;;  %v3610_v53 = vadd.s32 4294967184, %v3403_v45  ;;  %v3613_v11 = vadd.s32 4294967176, %v3403_v45 }
 0x2ef   : > { %v1738_v40 = vadd.f32 %v3405_v44, %v3381_v58  ;;  %v1739_v12 = vadd.f32 %v3405_v44, %v3379_v10  ;;  %v2112_v57 = vperm.slane %v1734_v19, %v3403_v45  ;;  %v2113_v37 = vperm.slane %v1735_v43, %v3411_v60  ;;  %v4379_v43 = vld [vmem:[#allocation87_spill] sm:$0xff] }
 0x2f0   : > { %v1621_v52 = vpop.xlane.xlu2 %1620  ;;  %v1618_v47 = vpop.xlane.xlu1 %1617  ;;  %v2115_v2 = vperm.slane %v1736_v31, %v3414_v34  ;;  %v1740_v48 = vadd.f32 %v3405_v44, %v3389_v24  ;;  %v1741_v58 = vadd.f32 %v3405_v44, %v3387_v51  ;;  %v1742_v41 = vadd.f32 %v3405_v44, %v3385_v22  ;;  %v4442_v34 = vld [vmem:[#allocation53_spill] sm:$0xff] }
 0x2f1   : > { %v3623_v29 = vadd.f32 %v3405_v44, %v1621_v52  ;;  %v3632_v10 = vadd.f32 %v3405_v44, %v1618_v47  ;;  %v1743_v28 = vadd.f32 %v3405_v44, %v3399_v0  ;;  %v2114_v8 = vsel %vm1899_vm3, %v2113_v37, %v2112_v57 }
 0x2f2   : > { %v2117_v63 = vperm.slane %v1737_v4, %v3417_v35  ;;  %v1744_v24 = vadd.f32 %v3405_v44, %v3393_v56  ;;  %v1745_v51 = vadd.f32 %v3405_v44, %v3391_v25  ;;  %v2116_v50 = vsel %vm1903_vm11, %v2115_v2, %v2114_v8  ;;  %v4383_v8 = vld [vmem:[#allocation11_spill] sm:$0xff] }
 0x2f3   : > { %v2119_v22 = vperm.slane %v1738_v40, %v3420_v36  ;;  %v1746_v30 = vadd.f32 %v3405_v44, %v4373_v7  ;;  %v1747_v0 = vadd.f32 %v3405_v44, %v4374_v42  ;;  %v2121_v27 = vperm.slane %v1739_v12, %v3408_v59 }
 0x2f4   : > { %v2118_v15 = vsel %vm1907_vm12, %v2117_v63, %v2116_v50  ;;  %v2166_v56 = vperm.slane %v3623_v29, %v4375_v62  ;;  %v3654_v25 = vadd.f32 %v3405_v44, %v4376_v6  ;;  %v2123_v18 = vperm.slane %v1740_v48, %v3428_v17 }
 0x2f5   : > { %v2120_v26 = vsel %vm1911_vm13, %v2119_v22, %v2118_v15  ;;  %v2164_v38 = vperm.slane %v3632_v10, %v4378_v9  ;;  %v2125_v46 = vperm.slane %v1741_v58, %v3425_v13  ;;  %v2127_v1 = vperm.slane %v1742_v41, %v3436_v14  ;;  %v4381_v58 = vld [vmem:[#allocation8_spill] sm:$0xff]  ;;  %v4382_v10 = vld [vmem:[#allocation7_spill] sm:$0xff]  ;;  %v4386_v22 = vld [vmem:[#allocation14_spill] sm:$0xff] }
 0x2f6   : > { %4377 = vst [vmem:[#allocation81_spill] sm:$0xff] %v3654_v25  ;;  %v2122_v21 = vsel %vm1915_vm14, %v2121_v27, %v2120_v26  ;;  %v2129_v19 = vperm.slane %v1743_v28, %v3433_v32  ;;  %v2131_v31 = vperm.slane %v1744_v24, %v4379_v43  ;;  %v2133_v52 = vperm.slane %v1745_v51, %v4378_v9  ;;  %v4384_v51 = vld [vmem:[#allocation10_spill] sm:$0xff]  ;;  %v4387_v15 = vld [vmem:[#allocation13_spill] sm:$0xff] }
 0x2f7   : > { %v2124_v54 = vsel %vm1919_vm15, %v2123_v18, %v2122_v21  ;;  %v2135_v4 = vperm.slane %v1746_v30, %v4375_v62  ;;  %v2137_v40 = vperm.slane %v1747_v0, %v3604_v23  ;;  %v2161_v2 = vsel %vm1931_vm2, %v2160_v16, %v2159_v20  ;;  %v4385_v16 = vld [vmem:[#allocation9_spill] sm:$0xff]  ;;  %v4389_v21 = vld [vmem:[#allocation15_spill] sm:$0xff] }
 0x2f8   : > { %v1582_v55 = vpop.xlane.xlu2 %1581  ;;  %v1624_v3 = vpop.xlane.xlu1 %1623  ;;  %v2126_v47 = vsel %vm1923_vm0, %v2125_v46, %v2124_v54  ;;  %v3681_v41 = vadd.f32 %v3405_v44, %v4381_v58  ;;  %v3685_v28 = vadd.f32 %v3405_v44, %v4382_v10  ;;  %v3689_v63 = vadd.f32 %v3405_v44, %v4383_v8  ;;  %v4394_v8 = vld [vmem:[#allocation22_spill] sm:$0xff] }
 0x2f9   : > { %v3668_v33 = vadd.f32 %v3405_v44, %v1582_v55  ;;  %v2128_v12 = vsel %vm1927_vm1, %v2127_v1, %v2126_v47  ;;  %v1763_v37 = vadd.f32 %v3405_v44, %v1624_v3  ;;  %v3694_v50 = vadd.f32 %v3405_v44, %v4384_v51  ;;  %v4388_v55 = vld [vmem:[#allocation12_spill] sm:$0xff]  ;;  %v4392_v47 = vld [vmem:[#allocation18_spill] sm:$0xff] }
 0x2fa   : > { %v2130_v48 = vsel %vm1931_vm2, %v2129_v19, %v2128_v12  ;;  %v3698_v20 = vadd.f32 %v3405_v44, %v4385_v16  ;;  %v3702_v7 = vadd.f32 %v3405_v44, %v4386_v22  ;;  %v3709_v27 = vadd.f32 %v3405_v44, %v4387_v15  ;;  %v4390_v1 = vld [vmem:[#allocation16_spill] sm:$0xff] }
 0x2fb   : > { %4380 = vst [vmem:[#allocation80_spill] sm:$0xff] %v3668_v33  ;;  %v2132_v24 = vsel %vm1935_vm4, %v2131_v31, %v2130_v48  ;;  %v3713_v6 = vadd.f32 %v3405_v44, %v4388_v55  ;;  %v2168_v26 = vperm.slane %v1763_v37, %v3604_v23  ;;  %v3719_v46 = vadd.f32 %v3405_v44, %v4389_v21  ;;  %v4391_v31 = vld [vmem:[#allocation19_spill] sm:$0xff]  ;;  %v4393_v37 = vld [vmem:[#allocation17_spill] sm:$0xff]  ;;  %v4396_v16 = vld [vmem:[#allocation20_spill] sm:$0xff] }
 0x2fc   : > { %v2134_v30 = vsel %vm1939_vm5, %v2133_v52, %v2132_v24  ;;  %v3723_v3 = vadd.f32 %v3405_v44, %v4390_v1  ;;  %v3728_v52 = vadd.f32 %v3405_v44, %v4391_v31  ;;  %v3732_v12 = vadd.f32 %v3405_v44, %v4392_v47  ;;  %v4399_v55 = vld [vmem:[#allocation23_spill] sm:$0xff]  ;;  %v4400_v21 = vld [vmem:[#allocation26_spill] sm:$0xff] }
 0x2fd   : > { %v2136_v54 = vsel %vm1943_vm6, %v2135_v4, %v2134_v30  ;;  %v3736_v48 = vadd.f32 %v3405_v44, %v4393_v37  ;;  %v3741_v24 = vadd.f32 %v3405_v44, %v4394_v8  ;;  %v4395_v4 = vld [vmem:[#allocation21_spill] sm:$0xff]  ;;  %v3749_v22 = vadd.f32 %v3405_v44, %v4396_v16 }
 0x2fe   : > { %v3745_v51 = vadd.f32 %v3405_v44, %v4395_v4  ;;  %v3764_v1 = vadd.f32 %v3405_v44, %v4400_v21  ;;  %v3767_v31 = vsel %vm1947_vm7, %v2137_v40, %v2136_v54  ;;  %v4402_v37 = vld [vmem:[#allocation25_spill] sm:$0xff]  ;;  %v4406_v40 = vld [vmem:[#allocation27_spill] sm:$0xff] }
 0x2ff   : > { %v1615_v0 = vpop.xlane.xlu0 %1614  ;;  %4401 = vst [vmem:[#allocation79_spill] sm:$0xff] %v3767_v31  ;;  %v4403_v8 = vld [vmem:[#allocation29_spill] sm:$0xff] }
 0x300   : > { %v1760_v18 = vadd.f32 %v3405_v44, %v1615_v0  ;;  %v1627_v19 = vpop.xlane.xlu1 %1626  ;;  %v1630_v10 = vpop.xlane.xlu2 %1629  ;;  %v4398_v0 = vld [vmem:[#allocation24_spill] sm:$0xff]  ;;  %v3776_v4 = vadd.f32 %v3405_v44, %v4403_v8 }
 0x301   : > { %v3752_v30 = vadd.f32 %v3405_v44, %v1627_v19  ;;  %v3756_v15 = vadd.f32 %v3405_v44, %v4398_v0  ;;  %v3772_v19 = vadd.f32 %v3405_v44, %v4402_v37  ;;  %v3780_v0 = vadd.f32 %v3405_v44, %v1630_v10 }
 0x302   : > { %v2162_v58 = vperm.slane %v1760_v18, %v4379_v43  ;;  %v3760_v18 = vadd.f32 %v3405_v44, %v4399_v55  ;;  %v4405_v55 = vld [vmem:[#allocation28_spill] sm:$0xff] }
 0x303   : > { %4397 = vst [vmem:[#allocation85_spill] sm:$0xff] %v3752_v30  ;;  %v3784_v21 = vadd.f32 %v3405_v44, %v4405_v55  ;;  %v4416_v55 = vld [vmem:[#allocation38_spill] sm:$0xff]  ;;  %v4417_v30 = vld [vmem:[#allocation37_spill] sm:$0xff] }
 0x304   : > { %v2163_v47 = vsel %vm1935_vm4, %v2162_v58, %v2161_v2  ;;  %4404 = vst [vmem:[#allocation86_spill] sm:$0xff] %v3780_v0  ;;  %v3788_v2 = vadd.f32 %v3405_v44, %v4406_v40  ;;  %v4407_v58 = vld [vmem:[#allocation32_spill] sm:$0xff]  ;;  %v4410_v40 = vld [vmem:[#allocation35_spill] sm:$0xff] }
 0x305   : > { %v2165_v16 = vsel %vm1939_vm5, %v2164_v38, %v2163_v47  ;;  %v3796_v37 = vadd.f32 %v3405_v44, %v4407_v58  ;;  %v4408_v38 = vld [vmem:[#allocation31_spill] sm:$0xff]  ;;  %v4409_v47 = vld [vmem:[#allocation30_spill] sm:$0xff]  ;;  %v3810_v29 = vadd.f32 %v3405_v44, %v4410_v40  ;;  %v4412_v58 = vld [vmem:[#allocation33_spill] sm:$0xff]  ;;  %v3830_v40 = vadd.f32 %v3405_v44, %v4416_v55 }
 0x306   : > { %v2167_v54 = vsel %vm1943_vm6, %v2166_v56, %v2165_v16  ;;  %v3800_v10 = vadd.f32 %v3405_v44, %v4408_v38  ;;  %v3804_v8 = vadd.f32 %v3405_v44, %v4409_v47  ;;  %v4411_v56 = vld [vmem:[#allocation34_spill] sm:$0xff]  ;;  %v3818_v42 = vadd.f32 %v3405_v44, %v4412_v58  ;;  %v4414_v38 = vld [vmem:[#allocation36_spill] sm:$0xff]  ;;  %v4415_v47 = vld [vmem:[#allocation39_spill] sm:$0xff] }
 0x307   : > { %v3814_v16 = vadd.f32 %v3405_v44, %v4411_v56  ;;  %v3822_v57 = vadd.f32 %v3405_v44, %v4414_v38  ;;  %v3826_v33 = vadd.f32 %v3405_v44, %v4415_v47  ;;  %v3834_v56 = vadd.f32 %v3405_v44, %v4417_v30  ;;  %v4419_v58 = vld [vmem:[#allocation42_spill] sm:$0xff]  ;;  %v4420_v38 = vld [vmem:[#allocation41_spill] sm:$0xff]  ;;  %v4421_v47 = vld [vmem:[#allocation40_spill] sm:$0xff] }
 0x308   : > { %4413 = vst [vmem:[#allocation87_spill] sm:$0xff] %v3818_v42  ;;  %v3837_v0 = vsel %vm1947_vm7, %v2168_v26, %v2167_v54  ;;  %v3841_v25 = vadd.f32 %v3405_v44, %v4419_v58  ;;  %v3845_v31 = vadd.f32 %v3405_v44, %v4420_v38  ;;  %v3849_v36 = vadd.f32 %v3405_v44, %v4421_v47  ;;  %v4423_v55 = vld [vmem:[#allocation45_spill] sm:$0xff]  ;;  %v4425_v30 = vld [vmem:[#allocation44_spill] sm:$0xff]  ;;  %v4427_v54 = vld [vmem:[#allocation43_spill] sm:$0xff] }
 0x309   : > { %4418 = vst [vmem:[#allocation8_spill] sm:$0xff] %v3837_v0  ;;  %v3853_v35 = vadd.f32 %v3405_v44, %v4423_v55  ;;  %v3857_v26 = vadd.f32 %v3405_v44, %v4425_v30  ;;  %v3861_v58 = vadd.f32 %v3405_v44, %v4427_v54  ;;  %v4429_v0 = vld [vmem:[#allocation48_spill] sm:$0xff]  ;;  %v4431_v42 = vld [vmem:[#allocation47_spill] sm:$0xff] }
 0x30a   : > { %4422 = vst [vmem:[#allocation7_spill] sm:$0xff] %v3849_v36  ;;  %v3865_v38 = vadd.f32 %v3405_v44, %v4429_v0  ;;  %v3869_v47 = vadd.f32 %v3405_v44, %v4431_v42  ;;  %v4432_v36 = vld [vmem:[#allocation46_spill] sm:$0xff] }
 0x30b   : > { %4424 = vst [vmem:[#allocation11_spill] sm:$0xff] %v3853_v35  ;;  %v3873_v55 = vadd.f32 %v3405_v44, %v4432_v36  ;;  %v4434_v35 = vld [vmem:[#allocation51_spill] sm:$0xff]  ;;  %v3893_v36 = vadd.f32 %v3405_v44, %v4442_v34 }
 0x30c   : > { %4426 = vst [vmem:[#allocation10_spill] sm:$0xff] %v3857_v26  ;;  %v3877_v30 = vadd.f32 %v3405_v44, %v4434_v35  ;;  %v4436_v26 = vld [vmem:[#allocation50_spill] sm:$0xff] }
 0x30d   : > { %4428 = vst [vmem:[#allocation9_spill] sm:$0xff] %v3861_v58  ;;  %v3881_v54 = vadd.f32 %v3405_v44, %v4436_v26  ;;  %v4438_v58 = vld [vmem:[#allocation49_spill] sm:$0xff] }
 0x30e   : > { %4430 = vst [vmem:[#allocation14_spill] sm:$0xff] %v3865_v38  ;;  %v3885_v0 = vadd.f32 %v3405_v44, %v4438_v58  ;;  %v4440_v38 = vld [vmem:[#allocation54_spill] sm:$0xff] }
 0x30f   : > { %4433 = vst [vmem:[#allocation13_spill] sm:$0xff] %v3873_v55  ;;  %v3889_v42 = vadd.f32 %v3405_v44, %v4440_v38  ;;  %v4444_v55 = vld [vmem:[#allocation52_spill] sm:$0xff] }
 0x310   : > { %4435 = vst [vmem:[#allocation12_spill] sm:$0xff] %v3877_v30  ;;  %v3897_v35 = vadd.f32 %v3405_v44, %v4444_v55  ;;  %v4446_v30 = vld [vmem:[#allocation57_spill] sm:$0xff] }
 0x311   : > { %4437 = vst [vmem:[#allocation15_spill] sm:$0xff] %v3881_v54  ;;  %v3901_v26 = vadd.f32 %v3405_v44, %v4446_v30  ;;  %v4448_v54 = vld [vmem:[#allocation56_spill] sm:$0xff] }
 0x312   : > { %4439 = vst [vmem:[#allocation16_spill] sm:$0xff] %v3885_v0  ;;  %v3905_v58 = vadd.f32 %v3405_v44, %v4448_v54  ;;  %v4450_v0 = vld [vmem:[#allocation55_spill] sm:$0xff] }
 0x313   : > { %4441 = vst [vmem:[#allocation19_spill] sm:$0xff] %v3889_v42  ;;  %v3909_v38 = vadd.f32 %v3405_v44, %v4450_v0  ;;  %v4452_v42 = vld [vmem:[#allocation60_spill] sm:$0xff] }
 0x314   : > { %4443 = vst [vmem:[#allocation18_spill] sm:$0xff] %v3893_v36  ;;  %v3913_v34 = vadd.f32 %v3405_v44, %v4452_v42  ;;  %v4454_v36 = vld [vmem:[#allocation59_spill] sm:$0xff] }
 0x315   : > { %4445 = vst [vmem:[#allocation17_spill] sm:$0xff] %v3897_v35  ;;  %v3917_v55 = vadd.f32 %v3405_v44, %v4454_v36  ;;  %v4456_v35 = vld [vmem:[#allocation58_spill] sm:$0xff] }
 0x316   : > { %4447 = vst [vmem:[#allocation22_spill] sm:$0xff] %v3901_v26  ;;  %v3921_v30 = vadd.f32 %v3405_v44, %v4456_v35  ;;  %v4458_v26 = vld [vmem:[#allocation63_spill] sm:$0xff] }
 0x317   : > { %4449 = vst [vmem:[#allocation21_spill] sm:$0xff] %v3905_v58  ;;  %v3925_v54 = vadd.f32 %v3405_v44, %v4458_v26  ;;  %v4460_v58 = vld [vmem:[#allocation62_spill] sm:$0xff] }
 0x318   : > { %4451 = vst [vmem:[#allocation20_spill] sm:$0xff] %v3909_v38  ;;  %v3929_v0 = vadd.f32 %v3405_v44, %v4460_v58  ;;  %v4462_v38 = vld [vmem:[#allocation61_spill] sm:$0xff] }
 0x319   : > { %4453 = vst [vmem:[#allocation24_spill] sm:$0xff] %v3913_v34  ;;  %v3933_v42 = vadd.f32 %v3405_v44, %v4462_v38  ;;  %v4464_v34 = vld [vmem:[#allocation66_spill] sm:$0xff] }
 0x31a   : > { %4455 = vst [vmem:[#allocation23_spill] sm:$0xff] %v3917_v55  ;;  %v3937_v36 = vadd.f32 %v3405_v44, %v4464_v34  ;;  %v4466_v55 = vld [vmem:[#allocation65_spill] sm:$0xff] }
 0x31b   : > { %4457 = vst [vmem:[#allocation26_spill] sm:$0xff] %v3921_v30  ;;  %v3941_v35 = vadd.f32 %v3405_v44, %v4466_v55  ;;  %v4468_v30 = vld [vmem:[#allocation64_spill] sm:$0xff] }
 0x31c   : > { %4459 = vst [vmem:[#allocation25_spill] sm:$0xff] %v3925_v54  ;;  %v3945_v26 = vadd.f32 %v3405_v44, %v4468_v30  ;;  %v4470_v54 = vld [vmem:[#allocation69_spill] sm:$0xff] }
 0x31d   : > { %4461 = vst [vmem:[#allocation29_spill] sm:$0xff] %v3929_v0  ;;  %v3949_v58 = vadd.f32 %v3405_v44, %v4470_v54  ;;  %v4472_v0 = vld [vmem:[#allocation68_spill] sm:$0xff] }
 0x31e   : > { %4463 = vst [vmem:[#allocation28_spill] sm:$0xff] %v3933_v42  ;;  %v3953_v38 = vadd.f32 %v3405_v44, %v4472_v0  ;;  %v4474_v42 = vld [vmem:[#allocation67_spill] sm:$0xff] }
 0x31f   : > { %4465 = vst [vmem:[#allocation27_spill] sm:$0xff] %v3937_v36  ;;  %v3957_v34 = vadd.f32 %v3405_v44, %v4474_v42  ;;  %v4476_v36 = vld [vmem:[#allocation72_spill] sm:$0xff]  ;;  %v1922_v42 = vperm.slane %v3681_v41, %v3425_v13  ;;  %v1930_v41 = vperm.slane %v3689_v63, %v3433_v32 }
 0x320   : > { %4467 = vst [vmem:[#allocation32_spill] sm:$0xff] %v3941_v35  ;;  %v3961_v55 = vadd.f32 %v3405_v44, %v4476_v36  ;;  %v4478_v35 = vld [vmem:[#allocation71_spill] sm:$0xff] }
 0x321   : > { %4469 = vst [vmem:[#allocation31_spill] sm:$0xff] %v3945_v26  ;;  %v3965_v30 = vadd.f32 %v3405_v44, %v4478_v35  ;;  %v4480_v26 = vld [vmem:[#allocation70_spill] sm:$0xff] }
 0x322   : > { %4471 = vst [vmem:[#allocation30_spill] sm:$0xff] %v3949_v58  ;;  %v3969_v54 = vadd.f32 %v3405_v44, %v4480_v26  ;;  %v4481_v58 = vld [vmem:[#allocation75_spill] sm:$0xff]  ;;  %v4485_v35 = vld [vmem:[#allocation78_spill] sm:$0xff]  ;;  %v1926_v26 = vperm.slane %v3685_v28, %v3436_v14  ;;  %v1942_v28 = vperm.slane %v3702_v7, %v4375_v62  ;;  %v1976_v7 = vperm.slane %v3736_v48, %v4379_v43 }
 0x323   : > { %4473 = vst [vmem:[#allocation35_spill] sm:$0xff] %v3953_v38  ;;  %v3973_v0 = vadd.f32 %v3405_v44, %v4481_v58  ;;  %v1924_v58 = vsel %vm1923_vm0, %v1922_v42, %v3595_v5  ;;  %v1972_v5 = vperm.slane %v3728_v52, %v3436_v14  ;;  %v1974_v42 = vperm.slane %v3732_v12, %v3433_v32 }
 0x324   : > { %4475 = vst [vmem:[#allocation34_spill] sm:$0xff] %v3957_v34  ;;  %v4482_v34 = vld [vmem:[#allocation74_spill] sm:$0xff]  ;;  %v1978_v52 = vperm.slane %v3741_v24, %v4378_v9  ;;  %v1997_v12 = vperm.slane %v3764_v1, %v3408_v59  ;;  %v1982_v48 = vperm.slane %v3749_v22, %v3604_v23  ;;  %v1999_v24 = vperm.slane %v3772_v19, %v3428_v17 }
 0x325   : > { %4477 = vst [vmem:[#allocation33_spill] sm:$0xff] %v3961_v55  ;;  %v3979_v36 = vadd.f32 %v3405_v44, %v4482_v34  ;;  %v4483_v55 = vld [vmem:[#allocation73_spill] sm:$0xff]  ;;  %v1934_v34 = vperm.slane %v3694_v50, %v4379_v43  ;;  %v1946_v50 = vperm.slane %v3709_v27, %v3604_v23  ;;  %v2001_v1 = vperm.slane %v3776_v4, %v3425_v13 }
 0x326   : > { %4479 = vst [vmem:[#allocation36_spill] sm:$0xff] %v3965_v30  ;;  %v3983_v38 = vadd.f32 %v3405_v44, %v4483_v55  ;;  %v3987_v30 = vadd.f32 %v3405_v44, %v4485_v35  ;;  %v1970_v55 = vperm.slane %v3723_v3, %v3425_v13  ;;  %v1938_v35 = vperm.slane %v3698_v20, %v4378_v9 }
 0x327   : > { %v2003_v19 = vperm.slane %v3784_v21, %v3436_v14  ;;  %v2005_v4 = vperm.slane %v3788_v2, %v3433_v32  ;;  %v2007_v21 = vperm.slane %v3796_v37, %v4379_v43  ;;  %v2009_v2 = vperm.slane %v3800_v10, %v4378_v9 }
 0x328   : > { %4484 = vst [vmem:[#allocation39_spill] sm:$0xff] %v3983_v38  ;;  %v1928_v38 = vsel %vm1927_vm1, %v1926_v26, %v1924_v58  ;;  %v1971_v3 = vsel %vm1923_vm0, %v1970_v55, %v3600_v39  ;;  %v1980_v39 = vperm.slane %v3745_v51, %v4375_v62  ;;  %v1998_v51 = vsel %vm1915_vm14, %v1997_v12, %v3589_v61 }
 0x329   : > { %v1932_v63 = vsel %vm1931_vm2, %v1930_v41, %v1928_v38  ;;  %v1973_v20 = vsel %vm1927_vm1, %v1972_v5, %v1971_v3  ;;  %v2000_v22 = vsel %vm1919_vm15, %v1999_v24, %v1998_v51  ;;  %v4486_v5 = vld [vmem:[#allocation77_spill] sm:$0xff]  ;;  %v1984_v3 = vperm.slane %v3756_v15, %v3610_v53 }
 0x32a   : > { %v1936_v26 = vsel %vm1935_vm4, %v1934_v34, %v1932_v63  ;;  %v1975_v27 = vsel %vm1931_vm2, %v1974_v42, %v1973_v20  ;;  %v4045_v63 = vadd.f32 %v3405_v44, %v4486_v5  ;;  %v2002_v61 = vsel %vm1923_vm0, %v2001_v1, %v2000_v22  ;;  %v4489_v1 = vld [vmem:[#allocation82_spill] sm:$0xff] }
 0x32b   : > { %v1940_v38 = vsel %vm1939_vm5, %v1938_v35, %v1936_v26  ;;  %v1977_v41 = vsel %vm1935_vm4, %v1976_v7, %v1975_v27  ;;  %v1950_v35 = vperm.slane %v3713_v6, %v3610_v53  ;;  %v2004_v42 = vsel %vm1927_vm1, %v2003_v19, %v2002_v61  ;;  %v4487_v26 = vld [vmem:[#allocation76_spill] sm:$0xff] }
 0x32c   : > { %v1944_v58 = vsel %vm1943_vm6, %v1942_v28, %v1940_v38  ;;  %v1979_v55 = vsel %vm1939_vm5, %v1978_v52, %v1977_v41  ;;  %v4059_v20 = vadd.f32 %v3405_v44, %v4487_v26  ;;  %v1954_v7 = vperm.slane %v3719_v46, %v3613_v11  ;;  %v4496_v26 = vld [vmem:[#allocation10_spill] sm:$0xff] }
 0x32d   : > { %v1948_v34 = vsel %vm1947_vm7, %v1946_v50, %v1944_v58  ;;  %v1981_v28 = vsel %vm1943_vm6, %v1980_v39, %v1979_v55  ;;  %v2006_v52 = vsel %vm1931_vm2, %v2005_v4, %v2004_v42  ;;  %v2011_v27 = vperm.slane %v3804_v8, %v4375_v62  ;;  %v4488_v55 = vld [vmem:[#allocation13_spill] sm:$0xff] }
 0x32e   : > { %v1983_v50 = vsel %vm1947_vm7, %v1982_v48, %v1981_v28  ;;  %v1952_v6 = vsel %vm1951_vm8, %v1950_v35, %v1948_v34  ;;  %v2008_v15 = vsel %vm1935_vm4, %v2007_v21, %v2006_v52  ;;  %v2028_v37 = vperm.slane %v3822_v57, %v3408_v59  ;;  %v4491_v28 = vld [vmem:[#allocation87_spill] sm:$0xff] }
 0x32f   : > { %v1985_v38 = vsel %vm1951_vm8, %v1984_v3, %v1983_v50  ;;  %v4073_v44 = vsel %vm1955_vm9, %v1954_v7, %v1952_v6  ;;  %v1986_v46 = vperm.slane %v3760_v18, %v3613_v11  ;;  %v2010_v39 = vsel %vm1939_vm5, %v2009_v2, %v2008_v15  ;;  %v4494_v6 = vld [vmem:[#allocation83_spill] sm:$0xff]  ;;  %v4497_v2 = vld [vmem:[#allocation84_spill] sm:$0xff] }
 0x330   : > { %v2030_v10 = vperm.slane %v3826_v33, %v3428_v17  ;;  %v2012_v12 = vsel %vm1943_vm6, %v2011_v27, %v2010_v39  ;;  %v2013_v58 = vperm.slane %v3810_v29, %v3604_v23  ;;  %v2029_v8 = vsel %vm1915_vm14, %v2028_v37, %v3592_v49  ;;  %v4495_v3 = vld [vmem:[#allocation15_spill] sm:$0xff]  ;;  %v4499_v27 = vld [vmem:[#allocation9_spill] sm:$0xff] }
 0x331   : > { %v2032_v57 = vperm.slane %v3830_v40, %v3425_v13  ;;  %v4088_v41 = vsel %vm1955_vm9, %v1986_v46, %v1985_v38  ;;  %v2015_v18 = vperm.slane %v3814_v16, %v3610_v53  ;;  %v2034_v33 = vperm.slane %v3834_v56, %v3436_v14  ;;  %v4490_v56 = vld [vmem:[#allocation12_spill] sm:$0xff]  ;;  %v4500_v46 = vld [vmem:[#allocation14_spill] sm:$0xff] }
 0x332   : > { %v2031_v48 = vsel %vm1919_vm15, %v2030_v10, %v2029_v8  ;;  %v2014_v24 = vsel %vm1947_vm7, %v2013_v58, %v2012_v12  ;;  %v2036_v49 = vperm.slane %v3841_v25, %v3433_v32  ;;  %v2050_v40 = vperm.slane %v3869_v47, %v3403_v45  ;;  %v4492_v25 = vld [vmem:[#allocation7_spill] sm:$0xff]  ;;  %v4498_v38 = vld [vmem:[#allocation16_spill] sm:$0xff] }
 0x333   : > { %v2033_v29 = vsel %vm1923_vm0, %v2032_v57, %v2031_v48  ;;  %v2038_v16 = vperm.slane %v3845_v31, %v4379_v43  ;;  %v2051_v51 = vperm.slane %v4488_v55, %v3411_v60  ;;  %v2053_v35 = vperm.slane %v4490_v56, %v4489_v1  ;;  %v4493_v47 = vld [vmem:[#allocation11_spill] sm:$0xff]  ;;  %v4502_v48 = vld [vmem:[#allocation18_spill] sm:$0xff]  ;;  %v4506_v56 = vld [vmem:[#allocation20_spill] sm:$0xff] }
 0x334   : > { %v2035_v34 = vsel %vm1927_vm1, %v2034_v33, %v2033_v29  ;;  %v2017_v22 = vperm.slane %v4491_v28, %v3613_v11  ;;  %v2040_v5 = vperm.slane %v4492_v25, %v4378_v9  ;;  %v2042_v50 = vperm.slane %v4493_v47, %v4375_v62  ;;  %v4501_v12 = vld [vmem:[#allocation19_spill] sm:$0xff]  ;;  %v4503_v29 = vld [vmem:[#allocation17_spill] sm:$0xff]  ;;  %v4507_v28 = vld [vmem:[#allocation28_spill] sm:$0xff] }
 0x335   : > { %v2037_v19 = vsel %vm1931_vm2, %v2036_v49, %v2035_v34  ;;  %v2016_v61 = vsel %vm1951_vm8, %v2015_v18, %v2014_v24  ;;  %v2052_v4 = vsel %vm1899_vm3, %v2051_v51, %v2050_v40  ;;  %v2055_v42 = vperm.slane %v4495_v3, %v4494_v6  ;;  %v4504_v40 = vld [vmem:[#allocation22_spill] sm:$0xff] }
 0x336   : > { %v2039_v31 = vsel %vm1935_vm4, %v2038_v16, %v2037_v19  ;;  %v2044_v7 = vperm.slane %v4496_v26, %v3604_v23  ;;  %v2054_v52 = vsel %vm1903_vm11, %v2053_v35, %v2052_v4  ;;  %v2057_v15 = vperm.slane %v4498_v38, %v4497_v2  ;;  %v4505_v16 = vld [vmem:[#allocation21_spill] sm:$0xff]  ;;  %v4508_v19 = vld [vmem:[#allocation27_spill] sm:$0xff] }
 0x337   : > { %v2041_v21 = vsel %vm1939_vm5, %v2040_v5, %v2039_v31  ;;  %v2046_v37 = vperm.slane %v4499_v27, %v3610_v53  ;;  %v2048_v39 = vperm.slane %v4500_v46, %v3613_v11  ;;  %v2056_v10 = vsel %vm1907_vm12, %v2055_v42, %v2054_v52  ;;  %v4510_v31 = vld [vmem:[#allocation32_spill] sm:$0xff]  ;;  %v4511_v42 = vld [vmem:[#allocation23_spill] sm:$0xff]  ;;  %v4513_v52 = vld [vmem:[#allocation26_spill] sm:$0xff] }
 0x338   : > { %v2059_v58 = vperm.slane %v4501_v12, %v3408_v59  ;;  %v2018_v8 = vsel %vm1955_vm9, %v2017_v22, %v2016_v61  ;;  %v2043_v57 = vsel %vm1943_vm6, %v2042_v50, %v2041_v21  ;;  %v2058_v18 = vsel %vm1911_vm13, %v2057_v15, %v2056_v10  ;;  %v4509_v50 = vld [vmem:[#allocation24_spill] sm:$0xff]  ;;  %v4512_v26 = vld [vmem:[#allocation31_spill] sm:$0xff]  ;;  %v4514_v27 = vld [vmem:[#allocation30_spill] sm:$0xff] }
 0x339   : > { %v2061_v33 = vperm.slane %v4502_v48, %v3428_v17  ;;  %v2063_v49 = vperm.slane %v4503_v29, %v3425_v13  ;;  %v2065_v34 = vperm.slane %v4504_v40, %v3436_v14  ;;  %v2067_v55 = vperm.slane %v4505_v16, %v3433_v32  ;;  %v4518_v29 = vld [vmem:[#allocation29_spill] sm:$0xff] }
 0x33a   : > { %v2060_v24 = vsel %vm1915_vm14, %v2059_v58, %v2058_v18  ;;  %v2069_v35 = vperm.slane %v4506_v56, %v4379_v43  ;;  %v2081_v22 = vperm.slane %v4507_v28, %v3403_v45  ;;  %v2082_v25 = vperm.slane %v4508_v19, %v3411_v60  ;;  %v4515_v58 = vld [vmem:[#allocation35_spill] sm:$0xff]  ;;  %v4516_v18 = vld [vmem:[#allocation25_spill] sm:$0xff]  ;;  %v4520_v56 = vld [vmem:[#allocation36_spill] sm:$0xff] }
 0x33b   : > { %v2062_v51 = vsel %vm1919_vm15, %v2061_v33, %v2060_v24  ;;  %v2045_v5 = vsel %vm1947_vm7, %v2044_v7, %v2043_v57  ;;  %v2071_v61 = vperm.slane %v4509_v50, %v4378_v9  ;;  %v2084_v4 = vperm.slane %v4510_v31, %v4489_v1  ;;  %v4517_v24 = vld [vmem:[#allocation34_spill] sm:$0xff] }
 0x33c   : > { %v2064_v47 = vsel %vm1923_vm0, %v2063_v49, %v2062_v51  ;;  %v2073_v21 = vperm.slane %v4511_v42, %v4375_v62  ;;  %v2083_v45 = vsel %vm1899_vm3, %v2082_v25, %v2081_v22  ;;  %v2086_v60 = vperm.slane %v4512_v26, %v4494_v6 }
 0x33d   : > { %v2066_v3 = vsel %vm1927_vm1, %v2065_v34, %v2064_v47  ;;  %v2075_v38 = vperm.slane %v4513_v52, %v3604_v23  ;;  %v2085_v15 = vsel %vm1903_vm11, %v2084_v4, %v2083_v45  ;;  %v2088_v1 = vperm.slane %v4514_v27, %v4497_v2 }
 0x33e   : > { %v2068_v7 = vsel %vm1931_vm2, %v2067_v55, %v2066_v3  ;;  %v2047_v46 = vsel %vm1951_vm8, %v2046_v37, %v2045_v5  ;;  %v2087_v12 = vsel %vm1907_vm12, %v2086_v60, %v2085_v15  ;;  %v2090_v57 = vperm.slane %v4515_v58, %v3408_v59  ;;  %v4519_v59 = vld [vmem:[#allocation33_spill] sm:$0xff]  ;;  %v4521_v5 = vld [vmem:[#allocation39_spill] sm:$0xff]  ;;  %v4529_v60 = vld [vmem:[#allocation80_spill] sm:$0xff] }
 0x33f   : > { %v2070_v10 = vsel %vm1935_vm4, %v2069_v35, %v2068_v7  ;;  %v2077_v48 = vperm.slane %v4516_v18, %v3610_v53  ;;  %v2089_v33 = vsel %vm1911_vm13, %v2088_v1, %v2087_v12  ;;  %v2092_v2 = vperm.slane %v4517_v24, %v3428_v17 }
 0x340   : > { %v2072_v6 = vsel %vm1939_vm5, %v2071_v61, %v2070_v10  ;;  %v2079_v49 = vperm.slane %v4518_v29, %v3613_v11  ;;  %v2091_v40 = vsel %vm1915_vm14, %v2090_v57, %v2089_v33  ;;  %v2094_v34 = vperm.slane %v4519_v59, %v3425_v13  ;;  %v4525_v61 = vld [vmem:[#allocation86_spill] sm:$0xff] }
 0x341   : > { %v2074_v37 = vsel %vm1943_vm6, %v2073_v21, %v2072_v6  ;;  %v2049_v16 = vsel %vm1955_vm9, %v2048_v39, %v2047_v46  ;;  %v2093_v51 = vsel %vm1919_vm15, %v2092_v2, %v2091_v40  ;;  %v2096_v17 = vperm.slane %v4520_v56, %v3436_v14 }
 0x342   : > { %v2076_v55 = vsel %vm1947_vm7, %v2075_v38, %v2074_v37  ;;  %v2095_v35 = vsel %vm1923_vm0, %v2094_v34, %v2093_v51  ;;  %v2098_v28 = vperm.slane %v3969_v54, %v3433_v32  ;;  %vm2176_vm3 = vcmask 1042434  }
 0x343   : > { %v2097_v22 = vsel %vm1927_vm1, %v2096_v17, %v2095_v35  ;;  %v2100_v13 = vperm.slane %v3973_v0, %v4379_v43  ;;  %v2175_v39 = vsel %vm2174_vm10, %v4088_v41, %v4073_v44  ;;  %vm2178_vm11 = vcmask 1043459   ;;  %v4522_v0 = vld [vmem:[#allocation79_spill] sm:$0xff]  ;;  %v4523_v44 = vld [vmem:[#allocation81_spill] sm:$0xff] }
 0x344   : > { %v2078_v14 = vsel %vm1951_vm8, %v2077_v48, %v2076_v55  ;;  %v2099_v19 = vsel %vm1931_vm2, %v2098_v28, %v2097_v22  ;;  %v2102_v32 = vperm.slane %v3979_v36, %v4378_v9  ;;  %v2177_v54 = vsel %vm2176_vm3, %v2018_v8, %v2175_v39  ;;  %v4527_v36 = vld [vmem:[#allocation85_spill] sm:$0xff] }
 0x345   : > { %v2101_v25 = vsel %vm1935_vm4, %v2100_v13, %v2099_v19  ;;  %v2104_v47 = vperm.slane %v4521_v5, %v4375_v62  ;;  %v2179_v43 = vsel %vm2178_vm11, %v2049_v16, %v2177_v54  ;;  %vm2180_vm12 = vcmask 1044484   ;;  %v4526_v62 = vld [vmem:[#allocation8_spill] sm:$0xff] }
 0x346   : > { %v4524_v41 = vperm.slane %v4523_v44, %v3610_v53  ;;  %v2172_v31 = vperm.slane %v4525_v61, %v3613_v11  ;;  %v2103_v4 = vsel %vm1939_vm5, %v2102_v32, %v2101_v25  ;;  %v2106_v9 = vperm.slane %v3987_v30, %v3604_v23 }
 0x347   : > { %v4528_v8 = vperm.slane %v4527_v36, %v3610_v53  ;;  %v2080_v42 = vsel %vm1955_vm9, %v2079_v49, %v2078_v14  ;;  %v2105_v21 = vsel %vm1943_vm6, %v2104_v47, %v2103_v4  ;;  %v2108_v45 = vperm.slane %v4045_v63, %v3610_v53 }
 0x348   : > { %v2140_v50 = vsel %vm1951_vm8, %v4524_v41, %v4522_v0  ;;  %v2107_v26 = vsel %vm1947_vm7, %v2106_v9, %v2105_v21  ;;  %v2110_v23 = vperm.slane %v4059_v20, %v3613_v11  ;;  %v2181_v30 = vsel %vm2180_vm12, %v2080_v42, %v2179_v43 }
 0x349   : > { %v2171_v3 = vsel %vm1951_vm8, %v4528_v8, %v4526_v62  ;;  %vm2182_vm13 = vcmask 1045509   ;;  %v4530_v7 = vperm.slane %v4529_v60, %v3613_v11  ;;  %v2109_v38 = vsel %vm1951_vm8, %v2108_v45, %v2107_v26 }
 0x34a   : > { %vm2184_vm14 = vcmask 1046534   ;;  %v2111_v53 = vsel %vm1955_vm9, %v2110_v23, %v2109_v38  ;;  %v2173_v63 = vsel %vm1955_vm9, %v2172_v31, %v2171_v3  ;;  %vm2186_vm15 = vcmask 1047559  }
 0x34b   : > { %v2142_v52 = vsel %vm1955_vm9, %v4530_v7, %v2140_v50  ;;  %v2183_v20 = vsel %vm2182_vm13, %v2111_v53, %v2181_v30 }
 0x34c   : > { %v2185_v15 = vsel %vm2184_vm14, %v2142_v52, %v2183_v20 }
 0x34d   : > { %v2187_v11 = vsel %vm2186_vm15, %v2173_v63, %v2185_v15 }
 0x34e   : > { %2189 = vst [vmem:[%s795_s18] sm:$0xff] %v2187_v11 }
 0x34f   : > { %2358 = shalt.err (!%p2355_p5)
}
 0x350   : > { %2287 = dma.vmem_to_hbm [thread:$0]  (%p2472_p6), %s2204_s19, 128, %s2206_s20, %s2191_s21  }
 0x351 PF: > { %s2217_s27 = sand.u32 1, %s2381_s23   ;;  %p2290_p7 = pnand %p2273_p9, %p2476_p8 }
 0x352   : > { %s2218_s14 = scalar_lea.sflag [#allocation5], %s2217_s27 }
 0x353   : > { %p2291_p10 = pneg %p2290_p7 }
 0x355   : > { %2376 = dma.done.wait (%p2291_p10), %s2218_s14, 128  }
 0x356   : > { %2378 = vsyncadd (%p2291_p10), %s2218_s14, 4294967168  ;;  %p18_p11 = scmp.ge.s32.totalorder %s2457_s28, 4   ;;  %s4531_s23 = smov %s2385_s24 }
 0x357   : > { %s4532_s24 = smov %s2389_s25  ;;  %s4533_s25 = smov %s2470_s7 }
 0x358   : > { %s4534_s26 = smov %s2457_s28  ;;  %20 = sbr.rel (!%p18_p11) target bundleno = 6 (0x6), region = 122 }
 0x35d   :  { %2224 = vsyncpa [#allocation5], 1 }
 0x35e   :  { %2226 = vsyncpa [#allocation5 + $0x1], 1 }

</bundles_post_ra>
